<compile_context>
chip_gen: v7x
topology: tpu7x:2x2x1
jax: 0.10.0
libtpu: 0.0.40
codegen_flags: <defaults>
</compile_context>

<pallas_src>
import numpy as np

import jax
import jax.numpy as jnp
from jax.experimental import pallas as pl
from jax.experimental.pallas import tpu as pltpu


# ----------------------------------------------------------------------------
# Fused LeNet kernel: processes a block of images per grid step, all in VMEM.
# ----------------------------------------------------------------------------
def _lenet_kernel(x_ref, t1_ref, b1_ref, sc1_ref, sr1_ref,
                  t2_ref, b2_ref, sc2_ref, sr2_ref,
                  w3_ref, b3_ref, w4_ref, b4_ref, w5_ref, b5_ref,
                  out_ref):
    f32 = jnp.float32
    bb = x_ref.shape[0]                      # images per grid step (static)

    # Weights are VMEM-resident for the whole call; load once per step.
    t1 = t1_ref[...]                         # (5, 28, 144)
    b1 = b1_ref[...]                         # (1, 144)
    sc1 = sc1_ref[...]                       # (143, 72)
    sr1 = sr1_ref[...]                       # (12, 23)
    t2 = t2_ref[...]                         # (5, 72, 128)
    b2 = b2_ref[...]                         # (1, 128)
    sc2 = sc2_ref[...]                       # (127, 64)
    sr2 = sr2_ref[...]                       # (4, 7)
    w3 = w3_ref[...]                         # (4, 64, 120)
    b3 = b3_ref[...]                         # (1, 120)
    w4 = w4_ref[...]                         # (120, 84)
    b4 = b4_ref[...]                         # (1, 84)
    w5 = w5_ref[...]                         # (84, 10)
    b5 = b5_ref[...]                         # (1, 10)

    for b in range(bb):
        x = x_ref[b]                                           # (28, 28)

        # ---- conv1 + bias + ReLU (5 banded MXU matmuls) --------------------
        # acc1[oh, co*24+ow] = sum_{ki,kj} x[oh+ki, ow+kj] * w1[ki, kj, 0, co]
        acc1 = jnp.dot(x[0:24, :], t1[0], preferred_element_type=f32)
        for ki in range(1, 5):
            acc1 = acc1 + jnp.dot(x[ki:ki + 24, :], t1[ki],
                                  preferred_element_type=f32)
        y1 = jnp.maximum(acc1 + b1, 0.0)                       # (24, 144)

        # ---- 2x2 max-pool #1 (pairwise max + 0/1 decimation matmuls) -------
        hmax = jnp.maximum(y1[:, 0:143], y1[:, 1:144])         # (24, 143)
        hsel = jnp.dot(hmax, sc1, preferred_element_type=f32)  # (24, 72)
        vmax = jnp.maximum(hsel[0:23, :], hsel[1:24, :])       # (23, 72)
        p1 = jnp.dot(sr1, vmax, preferred_element_type=f32)    # (12, 72)

        # ---- conv2 + bias + ReLU (5 channel-fused banded matmuls) ----------
        # acc2[oh, co*8+ow] = sum_{ci,ki,kj} p1[oh+ki, ci*12+ow+kj]*w2[ki,kj,ci,co]
        acc2 = jnp.dot(p1[0:8, :], t2[0], preferred_element_type=f32)
        for ki in range(1, 5):
            acc2 = acc2 + jnp.dot(p1[ki:ki + 8, :], t2[ki],
                                  preferred_element_type=f32)
        y2 = jnp.maximum(acc2 + b2, 0.0)                       # (8, 128)

        # ---- 2x2 max-pool #2 ------------------------------------------------
        hmax2 = jnp.maximum(y2[:, 0:127], y2[:, 1:128])        # (8, 127)
        hsel2 = jnp.dot(hmax2, sc2, preferred_element_type=f32)  # (8, 64)
        vmax2 = jnp.maximum(hsel2[0:7, :], hsel2[1:8, :])      # (7, 64)
        p2 = jnp.dot(sr2, vmax2, preferred_element_type=f32)   # (4, 64)

        # ---- fc1 (NCHW flatten folded into the weight layout) + ReLU -------
        z = b3                                                  # (1, 120)
        for h in range(4):
            z = z + jnp.dot(p2[h:h + 1, :], w3[h], preferred_element_type=f32)
        z = jnp.maximum(z, 0.0)

        # ---- fc2 + ReLU, fc3 -------------------------------------------------
        z = jnp.maximum(jnp.dot(z, w4, preferred_element_type=f32) + b4, 0.0)
        z = jnp.dot(z, w5, preferred_element_type=f32) + b5    # (1, 10)

        out_ref[b] = z.astype(out_ref.dtype)


# ----------------------------------------------------------------------------
# Parameter init (conv (KH,KW,Cin,Cout), fc (in,out); fc1's "in" index follows
# PyTorch's NCHW flatten order).
# ----------------------------------------------------------------------------
def init_params(key):
    keys = jax.random.split(key, 10)

    def u(k, shape, fan_in):
        bound = 1.0 / float(fan_in) ** 0.5
        return jax.random.uniform(k, shape, jnp.float32, -bound, bound)

    return {
        "w1": u(keys[0], (5, 5, 1, 6), 25),
        "b1": u(keys[1], (6,), 25),
        "w2": u(keys[2], (5, 5, 6, 16), 150),
        "b2": u(keys[3], (16,), 150),
        "fc1_w": u(keys[4], (256, 120), 256),
        "fc1_b": u(keys[5], (120,), 256),
        "fc2_w": u(keys[6], (120, 84), 120),
        "fc2_b": u(keys[7], (84,), 120),
        "fc3_w": u(keys[8], (84, 10), 84),
        "fc3_b": u(keys[9], (10,), 84),
    }


# ----------------------------------------------------------------------------
# One-time layout transforms ("init time" in a real deployment).
# ----------------------------------------------------------------------------
def _band_selector(kk, p_len, o_len):
    # sel[kj, p, ow] = 1.0 iff p == ow + kj
    kj = np.arange(kk)[:, None, None]
    p = np.arange(p_len)[None, :, None]
    ow = np.arange(o_len)[None, None, :]
    return (p == ow + kj).astype(np.float32)


def _pool_col_selector(n_ch, width):
    # picks column co*width + 2j -> output column co*(width/2) + j
    half = width // 2
    sc = np.zeros((n_ch * width - 1, n_ch * half), np.float32)
    for co in range(n_ch):
        for j in range(half):
            sc[co * width + 2 * j, co * half + j] = 1.0
    return sc


def _pool_row_selector(height):
    half = height // 2
    sr = np.zeros((half, height - 1), np.float32)
    for i in range(half):
        sr[i, 2 * i] = 1.0
    return sr


def prepare_params(params):
    f32 = jnp.float32

    # Banded conv-1 weights: t1[ki] (28, 6*24), column = co*24 + ow.
    sel1 = jnp.asarray(_band_selector(5, 28, 24))              # (5, 28, 24)
    t1 = jnp.einsum("kpw,akc->apcw", sel1,
                    params["w1"][:, :, 0, :]).reshape(5, 28, 6 * 24)

    # Channel-fused banded conv-2 weights: t2[ki] (6*12, 16*8),
    # row = ci*12 + p, col = co*8 + ow  -> conv2 is 5 matmuls of (8,72)x(72,128).
    sel2 = jnp.asarray(_band_selector(5, 12, 8))               # (5, 12, 8)
    t2 = jnp.einsum("kpw,akjc->ajpcw", sel2,
                    params["w2"]).reshape(5, 6 * 12, 16 * 8)

    b1x = jnp.repeat(params["b1"], 24).reshape(1, 6 * 24)
    b2x = jnp.repeat(params["b2"], 8).reshape(1, 16 * 8)

    # Fold PyTorch's NCHW flatten (feature = co*16 + h*4 + w) into fc1 weights:
    # fc1_wh[h, co*4 + w, :] = fc1_w[co*16 + h*4 + w, :]
    fc1_wh = jnp.transpose(params["fc1_w"].reshape(16, 4, 4, 120),
                           (1, 0, 2, 3)).reshape(4, 64, 120)

    return {
        "t1": t1.astype(f32), "b1x": b1x.astype(f32),
        "sc1": jnp.asarray(_pool_col_selector(6, 24)),         # (143, 72)
        "sr1": jnp.asarray(_pool_row_selector(24)),            # (12, 23)
        "t2": t2.astype(f32), "b2x": b2x.astype(f32),
        "sc2": jnp.asarray(_pool_col_selector(16, 8)),         # (127, 64)
        "sr2": jnp.asarray(_pool_row_selector(8)),             # (4, 7)
        "fc1_wh": fc1_wh.astype(f32),
        "fc1_b": params["fc1_b"].reshape(1, 120).astype(f32),
        "fc2_w": params["fc2_w"].astype(f32),
        "fc2_b": params["fc2_b"].reshape(1, 84).astype(f32),
        "fc3_w": params["fc3_w"].astype(f32),
        "fc3_b": params["fc3_b"].reshape(1, 10).astype(f32),
    }


# ----------------------------------------------------------------------------
# Forward pass: one pallas_call for the whole network.
# ----------------------------------------------------------------------------
def lenet_forward(prepared, x_nchw, block_b=8):
    n = x_nchw.shape[0]
    assert x_nchw.shape[1:] == (1, 28, 28), "LeNet expects (N, 1, 28, 28)"
    x = x_nchw.reshape(n, 28, 28)                              # Cin == 1

    # Block the batch: bb images per grid step; pad batch to a multiple of bb.
    bb = min(block_b, n)
    n_pad = ((n + bb - 1) // bb) * bb
    if n_pad != n:
        x = jnp.pad(x, ((0, n_pad - n), (0, 0), (0, 0)))

    def const_spec(arr):
        nd = arr.ndim
        return pl.BlockSpec(arr.shape, lambda i, _nd=nd: (0,) * _nd)

    w_args = (prepared["t1"], prepared["b1x"], prepared["sc1"], prepared["sr1"],
              prepared["t2"], prepared["b2x"], prepared["sc2"], prepared["sr2"],
              prepared["fc1_wh"], prepared["fc1_b"],
              prepared["fc2_w"], prepared["fc2_b"],
              prepared["fc3_w"], prepared["fc3_b"])

    out = pl.pallas_call(
        _lenet_kernel,
        out_shape=jax.ShapeDtypeStruct((n_pad, 1, 10), jnp.float32),
        grid=(n_pad // bb,),
        in_specs=[pl.BlockSpec((bb, 28, 28), lambda i: (i, 0, 0))]
                 + [const_spec(w) for w in w_args],
        out_specs=pl.BlockSpec((bb, 1, 10), lambda i: (i, 0, 0)),
        compiler_params=pltpu.CompilerParams(
            dimension_semantics=("parallel",)),
    )(x, *w_args)
    return out[:n, 0, :]


# ----------------------------------------------------------------------------
# Pure-XLA reference mirroring the PyTorch module op-for-op (for verification).
# ----------------------------------------------------------------------------
def lenet_reference(params, x_nchw):
    dn = ("NCHW", "OIHW", "NCHW")
    hi = jax.lax.Precision.HIGHEST

    def conv(x, w_khwc, b):
        w = jnp.transpose(w_khwc, (3, 2, 0, 1))                # -> OIHW
        y = jax.lax.conv_general_dilated(x, w, (1, 1), "VALID",
                                         dimension_numbers=dn, precision=hi)
        return y + b[None, :, None, None]

    def pool(x):
        return jax.lax.reduce_window(x, -jnp.inf, jax.lax.max,
                                     (1, 1, 2, 2), (1, 1, 2, 2), "VALID")

    y = pool(jnp.maximum(conv(x_nchw, params["w1"], params["b1"]), 0.0))
    y = pool(jnp.maximum(conv(y, params["w2"], params["b2"]), 0.0))
    y = y.reshape(y.shape[0], 16 * 4 * 4)
    y = jnp.maximum(jnp.dot(y, params["fc1_w"], precision=hi)
                    + params["fc1_b"], 0.0)
    y = jnp.maximum(jnp.dot(y, params["fc2_w"], precision=hi)
                    + params["fc2_b"], 0.0)
    return jnp.dot(y, params["fc3_w"], precision=hi) + params["fc3_b"]


if __name__ == "__main__":
    key = jax.random.PRNGKey(0)
    pkey, xkey = jax.random.split(key)
    params = init_params(pkey)
    prepared = prepare_params(params)

    # LeNet's fc1 (16*4*4) implies 28x28 single-channel inputs; batch=2 (NCHW).
    x = jax.random.normal(xkey, (2, 1, 28, 28), jnp.float32)

    fwd = jax.jit(lenet_forward)
    out = jax.block_until_ready(fwd(prepared, x))
    assert out.shape == (2, 10) and out.dtype == jnp.float32

    ref = jax.block_until_ready(lenet_reference(params, x))
    np.testing.assert_allclose(np.asarray(out), np.asarray(ref),
                               rtol=1e-2, atol=1e-2)
    print("KERNEL_OK")
</pallas_src>

<mosaic_0001>
module attributes {stable_mosaic.version = 11 : i64} {
  func.func @_lenet_kernel(%arg0: i32, %arg1: memref<2x28x28xf32, #tpu.memory_space<vmem>>, %arg2: memref<5x28x144xf32, #tpu.memory_space<vmem>>, %arg3: memref<1x144xf32, #tpu.memory_space<vmem>>, %arg4: memref<143x72xf32, #tpu.memory_space<vmem>>, %arg5: memref<12x23xf32, #tpu.memory_space<vmem>>, %arg6: memref<5x72x128xf32, #tpu.memory_space<vmem>>, %arg7: memref<1x128xf32, #tpu.memory_space<vmem>>, %arg8: memref<127x64xf32, #tpu.memory_space<vmem>>, %arg9: memref<4x7xf32, #tpu.memory_space<vmem>>, %arg10: memref<4x64x120xf32, #tpu.memory_space<vmem>>, %arg11: memref<1x120xf32, #tpu.memory_space<vmem>>, %arg12: memref<120x84xf32, #tpu.memory_space<vmem>>, %arg13: memref<1x84xf32, #tpu.memory_space<vmem>>, %arg14: memref<84x10xf32, #tpu.memory_space<vmem>>, %arg15: memref<1x10xf32, #tpu.memory_space<vmem>>, %arg16: memref<2x1x10xf32, #tpu.memory_space<vmem>>) attributes {dimension_semantics = [#tpu.dimension_semantics<parallel>], iteration_bounds = array<i64: 1>, scalar_prefetch = 0 : i64, scratch_operands = 0 : i64, tpu.core_type = #tpu.core_type<tc>, window_params = [{transform_indices = @transform_0, window_bounds = array<i64: 2, 28, 28>}, {pipeline_mode = #tpu.pipeline_mode<synchronous>, transform_indices = @transform_1, window_bounds = array<i64: 5, 28, 144>}, {pipeline_mode = #tpu.pipeline_mode<synchronous>, transform_indices = @transform_2, window_bounds = array<i64: 1, 144>}, {pipeline_mode = #tpu.pipeline_mode<synchronous>, transform_indices = @transform_3, window_bounds = array<i64: 143, 72>}, {pipeline_mode = #tpu.pipeline_mode<synchronous>, transform_indices = @transform_4, window_bounds = array<i64: 12, 23>}, {pipeline_mode = #tpu.pipeline_mode<synchronous>, transform_indices = @transform_5, window_bounds = array<i64: 5, 72, 128>}, {pipeline_mode = #tpu.pipeline_mode<synchronous>, transform_indices = @transform_6, window_bounds = array<i64: 1, 128>}, {pipeline_mode = #tpu.pipeline_mode<synchronous>, transform_indices = @transform_7, window_bounds = array<i64: 127, 64>}, {pipeline_mode = #tpu.pipeline_mode<synchronous>, transform_indices = @transform_8, window_bounds = array<i64: 4, 7>}, {pipeline_mode = #tpu.pipeline_mode<synchronous>, transform_indices = @transform_9, window_bounds = array<i64: 4, 64, 120>}, {pipeline_mode = #tpu.pipeline_mode<synchronous>, transform_indices = @transform_10, window_bounds = array<i64: 1, 120>}, {pipeline_mode = #tpu.pipeline_mode<synchronous>, transform_indices = @transform_11, window_bounds = array<i64: 120, 84>}, {pipeline_mode = #tpu.pipeline_mode<synchronous>, transform_indices = @transform_12, window_bounds = array<i64: 1, 84>}, {pipeline_mode = #tpu.pipeline_mode<synchronous>, transform_indices = @transform_13, window_bounds = array<i64: 84, 10>}, {pipeline_mode = #tpu.pipeline_mode<synchronous>, transform_indices = @transform_14, window_bounds = array<i64: 1, 10>}, {transform_indices = @transform_15, window_bounds = array<i64: 2, 1, 10>}]} {
    %c0 = arith.constant 0 : index
    %c0_0 = arith.constant 0 : index
    %c0_1 = arith.constant 0 : index
    %0 = vector.load %arg2[%c0, %c0_0, %c0_1] : memref<5x28x144xf32, #tpu.memory_space<vmem>>, vector<5x28x144xf32>
    %c0_2 = arith.constant 0 : index
    %c0_3 = arith.constant 0 : index
    %1 = vector.load %arg3[%c0_2, %c0_3] : memref<1x144xf32, #tpu.memory_space<vmem>>, vector<1x144xf32>
    %c0_4 = arith.constant 0 : index
    %c0_5 = arith.constant 0 : index
    %2 = vector.load %arg4[%c0_4, %c0_5] : memref<143x72xf32, #tpu.memory_space<vmem>>, vector<143x72xf32>
    %c0_6 = arith.constant 0 : index
    %c0_7 = arith.constant 0 : index
    %3 = vector.load %arg5[%c0_6, %c0_7] : memref<12x23xf32, #tpu.memory_space<vmem>>, vector<12x23xf32>
    %c0_8 = arith.constant 0 : index
    %c0_9 = arith.constant 0 : index
    %c0_10 = arith.constant 0 : index
    %4 = vector.load %arg6[%c0_8, %c0_9, %c0_10] : memref<5x72x128xf32, #tpu.memory_space<vmem>>, vector<5x72x128xf32>
    %c0_11 = arith.constant 0 : index
    %c0_12 = arith.constant 0 : index
    %5 = vector.load %arg7[%c0_11, %c0_12] : memref<1x128xf32, #tpu.memory_space<vmem>>, vector<1x128xf32>
    %c0_13 = arith.constant 0 : index
    %c0_14 = arith.constant 0 : index
    %6 = vector.load %arg8[%c0_13, %c0_14] : memref<127x64xf32, #tpu.memory_space<vmem>>, vector<127x64xf32>
    %c0_15 = arith.constant 0 : index
    %c0_16 = arith.constant 0 : index
    %7 = vector.load %arg9[%c0_15, %c0_16] : memref<4x7xf32, #tpu.memory_space<vmem>>, vector<4x7xf32>
    %c0_17 = arith.constant 0 : index
    %c0_18 = arith.constant 0 : index
    %c0_19 = arith.constant 0 : index
    %8 = vector.load %arg10[%c0_17, %c0_18, %c0_19] : memref<4x64x120xf32, #tpu.memory_space<vmem>>, vector<4x64x120xf32>
    %c0_20 = arith.constant 0 : index
    %c0_21 = arith.constant 0 : index
    %9 = vector.load %arg11[%c0_20, %c0_21] : memref<1x120xf32, #tpu.memory_space<vmem>>, vector<1x120xf32>
    %c0_22 = arith.constant 0 : index
    %c0_23 = arith.constant 0 : index
    %10 = vector.load %arg12[%c0_22, %c0_23] : memref<120x84xf32, #tpu.memory_space<vmem>>, vector<120x84xf32>
    %c0_24 = arith.constant 0 : index
    %c0_25 = arith.constant 0 : index
    %11 = vector.load %arg13[%c0_24, %c0_25] : memref<1x84xf32, #tpu.memory_space<vmem>>, vector<1x84xf32>
    %c0_26 = arith.constant 0 : index
    %c0_27 = arith.constant 0 : index
    %12 = vector.load %arg14[%c0_26, %c0_27] : memref<84x10xf32, #tpu.memory_space<vmem>>, vector<84x10xf32>
    %c0_28 = arith.constant 0 : index
    %c0_29 = arith.constant 0 : index
    %13 = vector.load %arg15[%c0_28, %c0_29] : memref<1x10xf32, #tpu.memory_space<vmem>>, vector<1x10xf32>
    %c0_30 = arith.constant 0 : index
    %c0_31 = arith.constant 0 : index
    %c0_32 = arith.constant 0 : index
    %14 = vector.load %arg1[%c0_30, %c0_31, %c0_32] : memref<2x28x28xf32, #tpu.memory_space<vmem>>, vector<1x28x28xf32>
    %15 = vector.shape_cast %14 : vector<1x28x28xf32> to vector<28x28xf32>
    %16 = vector.extract_strided_slice %15 {offsets = [0, 0], sizes = [24, 28], strides = [1, 1]} : vector<28x28xf32> to vector<24x28xf32>
    %17 = vector.extract_strided_slice %0 {offsets = [0, 0, 0], sizes = [1, 28, 144], strides = [1, 1, 1]} : vector<5x28x144xf32> to vector<1x28x144xf32>
    %18 = vector.shape_cast %17 : vector<1x28x144xf32> to vector<28x144xf32>
    %cst = arith.constant dense<0.000000e+00> : vector<24x144xf32>
    %19 = tpu.matmul %16, %18, %cst {dimension_numbers = #tpu.dot_dimension_numbers<[1], [0], [0], [1], [0, 0, 1, 1], [], []>} : vector<24x28xf32>, vector<28x144xf32>, vector<24x144xf32> -> vector<24x144xf32>
    %20 = vector.extract_strided_slice %15 {offsets = [1, 0], sizes = [24, 28], strides = [1, 1]} : vector<28x28xf32> to vector<24x28xf32>
    %21 = vector.extract_strided_slice %0 {offsets = [1, 0, 0], sizes = [1, 28, 144], strides = [1, 1, 1]} : vector<5x28x144xf32> to vector<1x28x144xf32>
    %22 = vector.shape_cast %21 : vector<1x28x144xf32> to vector<28x144xf32>
    %cst_33 = arith.constant dense<0.000000e+00> : vector<24x144xf32>
    %23 = tpu.matmul %20, %22, %cst_33 {dimension_numbers = #tpu.dot_dimension_numbers<[1], [0], [0], [1], [0, 0, 1, 1], [], []>} : vector<24x28xf32>, vector<28x144xf32>, vector<24x144xf32> -> vector<24x144xf32>
    %24 = arith.addf %19, %23 : vector<24x144xf32>
    %25 = vector.extract_strided_slice %15 {offsets = [2, 0], sizes = [24, 28], strides = [1, 1]} : vector<28x28xf32> to vector<24x28xf32>
    %26 = vector.extract_strided_slice %0 {offsets = [2, 0, 0], sizes = [1, 28, 144], strides = [1, 1, 1]} : vector<5x28x144xf32> to vector<1x28x144xf32>
    %27 = vector.shape_cast %26 : vector<1x28x144xf32> to vector<28x144xf32>
    %cst_34 = arith.constant dense<0.000000e+00> : vector<24x144xf32>
    %28 = tpu.matmul %25, %27, %cst_34 {dimension_numbers = #tpu.dot_dimension_numbers<[1], [0], [0], [1], [0, 0, 1, 1], [], []>} : vector<24x28xf32>, vector<28x144xf32>, vector<24x144xf32> -> vector<24x144xf32>
    %29 = arith.addf %24, %28 : vector<24x144xf32>
    %30 = vector.extract_strided_slice %15 {offsets = [3, 0], sizes = [24, 28], strides = [1, 1]} : vector<28x28xf32> to vector<24x28xf32>
    %31 = vector.extract_strided_slice %0 {offsets = [3, 0, 0], sizes = [1, 28, 144], strides = [1, 1, 1]} : vector<5x28x144xf32> to vector<1x28x144xf32>
    %32 = vector.shape_cast %31 : vector<1x28x144xf32> to vector<28x144xf32>
    %cst_35 = arith.constant dense<0.000000e+00> : vector<24x144xf32>
    %33 = tpu.matmul %30, %32, %cst_35 {dimension_numbers = #tpu.dot_dimension_numbers<[1], [0], [0], [1], [0, 0, 1, 1], [], []>} : vector<24x28xf32>, vector<28x144xf32>, vector<24x144xf32> -> vector<24x144xf32>
    %34 = arith.addf %29, %33 : vector<24x144xf32>
    %35 = vector.extract_strided_slice %15 {offsets = [4, 0], sizes = [24, 28], strides = [1, 1]} : vector<28x28xf32> to vector<24x28xf32>
    %36 = vector.extract_strided_slice %0 {offsets = [4, 0, 0], sizes = [1, 28, 144], strides = [1, 1, 1]} : vector<5x28x144xf32> to vector<1x28x144xf32>
    %37 = vector.shape_cast %36 : vector<1x28x144xf32> to vector<28x144xf32>
    %cst_36 = arith.constant dense<0.000000e+00> : vector<24x144xf32>
    %38 = tpu.matmul %35, %37, %cst_36 {dimension_numbers = #tpu.dot_dimension_numbers<[1], [0], [0], [1], [0, 0, 1, 1], [], []>} : vector<24x28xf32>, vector<28x144xf32>, vector<24x144xf32> -> vector<24x144xf32>
    %39 = arith.addf %34, %38 : vector<24x144xf32>
    %40 = vector.broadcast %1 : vector<1x144xf32> to vector<24x144xf32>
    %41 = arith.addf %39, %40 : vector<24x144xf32>
    %cst_37 = arith.constant 0.000000e+00 : f32
    %42 = vector.broadcast %cst_37 : f32 to vector<24x144xf32>
    %43 = arith.maximumf %41, %42 : vector<24x144xf32>
    %44 = vector.extract_strided_slice %43 {offsets = [0, 0], sizes = [24, 143], strides = [1, 1]} : vector<24x144xf32> to vector<24x143xf32>
    %45 = vector.extract_strided_slice %43 {offsets = [0, 1], sizes = [24, 143], strides = [1, 1]} : vector<24x144xf32> to vector<24x143xf32>
    %46 = arith.maximumf %44, %45 : vector<24x143xf32>
    %cst_38 = arith.constant dense<0.000000e+00> : vector<24x72xf32>
    %47 = tpu.matmul %46, %2, %cst_38 {dimension_numbers = #tpu.dot_dimension_numbers<[1], [0], [0], [1], [0, 0, 1, 1], [], []>} : vector<24x143xf32>, vector<143x72xf32>, vector<24x72xf32> -> vector<24x72xf32>
    %48 = vector.extract_strided_slice %47 {offsets = [0, 0], sizes = [23, 72], strides = [1, 1]} : vector<24x72xf32> to vector<23x72xf32>
    %49 = vector.extract_strided_slice %47 {offsets = [1, 0], sizes = [23, 72], strides = [1, 1]} : vector<24x72xf32> to vector<23x72xf32>
    %50 = arith.maximumf %48, %49 : vector<23x72xf32>
    %cst_39 = arith.constant dense<0.000000e+00> : vector<12x72xf32>
    %51 = tpu.matmul %3, %50, %cst_39 {dimension_numbers = #tpu.dot_dimension_numbers<[1], [0], [0], [1], [0, 0, 1, 1], [], []>} : vector<12x23xf32>, vector<23x72xf32>, vector<12x72xf32> -> vector<12x72xf32>
    %52 = vector.extract_strided_slice %51 {offsets = [0, 0], sizes = [8, 72], strides = [1, 1]} : vector<12x72xf32> to vector<8x72xf32>
    %53 = vector.extract_strided_slice %4 {offsets = [0, 0, 0], sizes = [1, 72, 128], strides = [1, 1, 1]} : vector<5x72x128xf32> to vector<1x72x128xf32>
    %54 = vector.shape_cast %53 : vector<1x72x128xf32> to vector<72x128xf32>
    %cst_40 = arith.constant dense<0.000000e+00> : vector<8x128xf32>
    %55 = tpu.matmul %52, %54, %cst_40 {dimension_numbers = #tpu.dot_dimension_numbers<[1], [0], [0], [1], [0, 0, 1, 1], [], []>} : vector<8x72xf32>, vector<72x128xf32>, vector<8x128xf32> -> vector<8x128xf32>
    %56 = vector.extract_strided_slice %51 {offsets = [1, 0], sizes = [8, 72], strides = [1, 1]} : vector<12x72xf32> to vector<8x72xf32>
    %57 = vector.extract_strided_slice %4 {offsets = [1, 0, 0], sizes = [1, 72, 128], strides = [1, 1, 1]} : vector<5x72x128xf32> to vector<1x72x128xf32>
    %58 = vector.shape_cast %57 : vector<1x72x128xf32> to vector<72x128xf32>
    %cst_41 = arith.constant dense<0.000000e+00> : vector<8x128xf32>
    %59 = tpu.matmul %56, %58, %cst_41 {dimension_numbers = #tpu.dot_dimension_numbers<[1], [0], [0], [1], [0, 0, 1, 1], [], []>} : vector<8x72xf32>, vector<72x128xf32>, vector<8x128xf32> -> vector<8x128xf32>
    %60 = arith.addf %55, %59 : vector<8x128xf32>
    %61 = vector.extract_strided_slice %51 {offsets = [2, 0], sizes = [8, 72], strides = [1, 1]} : vector<12x72xf32> to vector<8x72xf32>
    %62 = vector.extract_strided_slice %4 {offsets = [2, 0, 0], sizes = [1, 72, 128], strides = [1, 1, 1]} : vector<5x72x128xf32> to vector<1x72x128xf32>
    %63 = vector.shape_cast %62 : vector<1x72x128xf32> to vector<72x128xf32>
    %cst_42 = arith.constant dense<0.000000e+00> : vector<8x128xf32>
    %64 = tpu.matmul %61, %63, %cst_42 {dimension_numbers = #tpu.dot_dimension_numbers<[1], [0], [0], [1], [0, 0, 1, 1], [], []>} : vector<8x72xf32>, vector<72x128xf32>, vector<8x128xf32> -> vector<8x128xf32>
    %65 = arith.addf %60, %64 : vector<8x128xf32>
    %66 = vector.extract_strided_slice %51 {offsets = [3, 0], sizes = [8, 72], strides = [1, 1]} : vector<12x72xf32> to vector<8x72xf32>
    %67 = vector.extract_strided_slice %4 {offsets = [3, 0, 0], sizes = [1, 72, 128], strides = [1, 1, 1]} : vector<5x72x128xf32> to vector<1x72x128xf32>
    %68 = vector.shape_cast %67 : vector<1x72x128xf32> to vector<72x128xf32>
    %cst_43 = arith.constant dense<0.000000e+00> : vector<8x128xf32>
    %69 = tpu.matmul %66, %68, %cst_43 {dimension_numbers = #tpu.dot_dimension_numbers<[1], [0], [0], [1], [0, 0, 1, 1], [], []>} : vector<8x72xf32>, vector<72x128xf32>, vector<8x128xf32> -> vector<8x128xf32>
    %70 = arith.addf %65, %69 : vector<8x128xf32>
    %71 = vector.extract_strided_slice %51 {offsets = [4, 0], sizes = [8, 72], strides = [1, 1]} : vector<12x72xf32> to vector<8x72xf32>
    %72 = vector.extract_strided_slice %4 {offsets = [4, 0, 0], sizes = [1, 72, 128], strides = [1, 1, 1]} : vector<5x72x128xf32> to vector<1x72x128xf32>
    %73 = vector.shape_cast %72 : vector<1x72x128xf32> to vector<72x128xf32>
    %cst_44 = arith.constant dense<0.000000e+00> : vector<8x128xf32>
    %74 = tpu.matmul %71, %73, %cst_44 {dimension_numbers = #tpu.dot_dimension_numbers<[1], [0], [0], [1], [0, 0, 1, 1], [], []>} : vector<8x72xf32>, vector<72x128xf32>, vector<8x128xf32> -> vector<8x128xf32>
    %75 = arith.addf %70, %74 : vector<8x128xf32>
    %76 = vector.broadcast %5 : vector<1x128xf32> to vector<8x128xf32>
    %77 = arith.addf %75, %76 : vector<8x128xf32>
    %cst_45 = arith.constant 0.000000e+00 : f32
    %78 = vector.broadcast %cst_45 : f32 to vector<8x128xf32>
    %79 = arith.maximumf %77, %78 : vector<8x128xf32>
    %80 = vector.extract_strided_slice %79 {offsets = [0, 0], sizes = [8, 127], strides = [1, 1]} : vector<8x128xf32> to vector<8x127xf32>
    %81 = vector.extract_strided_slice %79 {offsets = [0, 1], sizes = [8, 127], strides = [1, 1]} : vector<8x128xf32> to vector<8x127xf32>
    %82 = arith.maximumf %80, %81 : vector<8x127xf32>
    %cst_46 = arith.constant dense<0.000000e+00> : vector<8x64xf32>
    %83 = tpu.matmul %82, %6, %cst_46 {dimension_numbers = #tpu.dot_dimension_numbers<[1], [0], [0], [1], [0, 0, 1, 1], [], []>} : vector<8x127xf32>, vector<127x64xf32>, vector<8x64xf32> -> vector<8x64xf32>
    %84 = vector.extract_strided_slice %83 {offsets = [0, 0], sizes = [7, 64], strides = [1, 1]} : vector<8x64xf32> to vector<7x64xf32>
    %85 = vector.extract_strided_slice %83 {offsets = [1, 0], sizes = [7, 64], strides = [1, 1]} : vector<8x64xf32> to vector<7x64xf32>
    %86 = arith.maximumf %84, %85 : vector<7x64xf32>
    %cst_47 = arith.constant dense<0.000000e+00> : vector<4x64xf32>
    %87 = tpu.matmul %7, %86, %cst_47 {dimension_numbers = #tpu.dot_dimension_numbers<[1], [0], [0], [1], [0, 0, 1, 1], [], []>} : vector<4x7xf32>, vector<7x64xf32>, vector<4x64xf32> -> vector<4x64xf32>
    %88 = vector.extract_strided_slice %87 {offsets = [0, 0], sizes = [1, 64], strides = [1, 1]} : vector<4x64xf32> to vector<1x64xf32>
    %89 = vector.extract_strided_slice %8 {offsets = [0, 0, 0], sizes = [1, 64, 120], strides = [1, 1, 1]} : vector<4x64x120xf32> to vector<1x64x120xf32>
    %90 = vector.shape_cast %89 : vector<1x64x120xf32> to vector<64x120xf32>
    %cst_48 = arith.constant dense<0.000000e+00> : vector<1x120xf32>
    %91 = tpu.matmul %88, %90, %cst_48 {dimension_numbers = #tpu.dot_dimension_numbers<[1], [0], [0], [1], [0, 0, 1, 1], [], []>} : vector<1x64xf32>, vector<64x120xf32>, vector<1x120xf32> -> vector<1x120xf32>
    %92 = arith.addf %9, %91 : vector<1x120xf32>
    %93 = vector.extract_strided_slice %87 {offsets = [1, 0], sizes = [1, 64], strides = [1, 1]} : vector<4x64xf32> to vector<1x64xf32>
    %94 = vector.extract_strided_slice %8 {offsets = [1, 0, 0], sizes = [1, 64, 120], strides = [1, 1, 1]} : vector<4x64x120xf32> to vector<1x64x120xf32>
    %95 = vector.shape_cast %94 : vector<1x64x120xf32> to vector<64x120xf32>
    %cst_49 = arith.constant dense<0.000000e+00> : vector<1x120xf32>
    %96 = tpu.matmul %93, %95, %cst_49 {dimension_numbers = #tpu.dot_dimension_numbers<[1], [0], [0], [1], [0, 0, 1, 1], [], []>} : vector<1x64xf32>, vector<64x120xf32>, vector<1x120xf32> -> vector<1x120xf32>
    %97 = arith.addf %92, %96 : vector<1x120xf32>
    %98 = vector.extract_strided_slice %87 {offsets = [2, 0], sizes = [1, 64], strides = [1, 1]} : vector<4x64xf32> to vector<1x64xf32>
    %99 = vector.extract_strided_slice %8 {offsets = [2, 0, 0], sizes = [1, 64, 120], strides = [1, 1, 1]} : vector<4x64x120xf32> to vector<1x64x120xf32>
    %100 = vector.shape_cast %99 : vector<1x64x120xf32> to vector<64x120xf32>
    %cst_50 = arith.constant dense<0.000000e+00> : vector<1x120xf32>
    %101 = tpu.matmul %98, %100, %cst_50 {dimension_numbers = #tpu.dot_dimension_numbers<[1], [0], [0], [1], [0, 0, 1, 1], [], []>} : vector<1x64xf32>, vector<64x120xf32>, vector<1x120xf32> -> vector<1x120xf32>
    %102 = arith.addf %97, %101 : vector<1x120xf32>
    %103 = vector.extract_strided_slice %87 {offsets = [3, 0], sizes = [1, 64], strides = [1, 1]} : vector<4x64xf32> to vector<1x64xf32>
    %104 = vector.extract_strided_slice %8 {offsets = [3, 0, 0], sizes = [1, 64, 120], strides = [1, 1, 1]} : vector<4x64x120xf32> to vector<1x64x120xf32>
    %105 = vector.shape_cast %104 : vector<1x64x120xf32> to vector<64x120xf32>
    %cst_51 = arith.constant dense<0.000000e+00> : vector<1x120xf32>
    %106 = tpu.matmul %103, %105, %cst_51 {dimension_numbers = #tpu.dot_dimension_numbers<[1], [0], [0], [1], [0, 0, 1, 1], [], []>} : vector<1x64xf32>, vector<64x120xf32>, vector<1x120xf32> -> vector<1x120xf32>
    %107 = arith.addf %102, %106 : vector<1x120xf32>
    %cst_52 = arith.constant 0.000000e+00 : f32
    %108 = vector.broadcast %cst_52 : f32 to vector<1x120xf32>
    %109 = arith.maximumf %107, %108 : vector<1x120xf32>
    %cst_53 = arith.constant dense<0.000000e+00> : vector<1x84xf32>
    %110 = tpu.matmul %109, %10, %cst_53 {dimension_numbers = #tpu.dot_dimension_numbers<[1], [0], [0], [1], [0, 0, 1, 1], [], []>} : vector<1x120xf32>, vector<120x84xf32>, vector<1x84xf32> -> vector<1x84xf32>
    %111 = arith.addf %110, %11 : vector<1x84xf32>
    %cst_54 = arith.constant 0.000000e+00 : f32
    %112 = vector.broadcast %cst_54 : f32 to vector<1x84xf32>
    %113 = arith.maximumf %111, %112 : vector<1x84xf32>
    %cst_55 = arith.constant dense<0.000000e+00> : vector<1x10xf32>
    %114 = tpu.matmul %113, %12, %cst_55 {dimension_numbers = #tpu.dot_dimension_numbers<[1], [0], [0], [1], [0, 0, 1, 1], [], []>} : vector<1x84xf32>, vector<84x10xf32>, vector<1x10xf32> -> vector<1x10xf32>
    %115 = arith.addf %114, %13 : vector<1x10xf32>
    %c0_56 = arith.constant 0 : index
    %c0_57 = arith.constant 0 : index
    %c0_58 = arith.constant 0 : index
    %116 = vector.load %arg16[%c0_56, %c0_57, %c0_58] : memref<2x1x10xf32, #tpu.memory_space<vmem>>, vector<1x1x10xf32>
    %117 = vector.shape_cast %116 : vector<1x1x10xf32> to vector<1x10xf32>
    %118 = vector.shape_cast %115 : vector<1x10xf32> to vector<1x1x10xf32>
    tpu.vector_store %arg16[%c0_56, %c0_57, %c0_58], %118 {strides = array<i32>} : memref<2x1x10xf32, #tpu.memory_space<vmem>>, vector<1x1x10xf32>,
    %c1 = arith.constant 1 : index
    %c0_59 = arith.constant 0 : index
    %c0_60 = arith.constant 0 : index
    %119 = vector.load %arg1[%c1, %c0_59, %c0_60] : memref<2x28x28xf32, #tpu.memory_space<vmem>>, vector<1x28x28xf32>
    %120 = vector.shape_cast %119 : vector<1x28x28xf32> to vector<28x28xf32>
    %121 = vector.extract_strided_slice %120 {offsets = [0, 0], sizes = [24, 28], strides = [1, 1]} : vector<28x28xf32> to vector<24x28xf32>
    %122 = vector.extract_strided_slice %0 {offsets = [0, 0, 0], sizes = [1, 28, 144], strides = [1, 1, 1]} : vector<5x28x144xf32> to vector<1x28x144xf32>
    %123 = vector.shape_cast %122 : vector<1x28x144xf32> to vector<28x144xf32>
    %cst_61 = arith.constant dense<0.000000e+00> : vector<24x144xf32>
    %124 = tpu.matmul %121, %123, %cst_61 {dimension_numbers = #tpu.dot_dimension_numbers<[1], [0], [0], [1], [0, 0, 1, 1], [], []>} : vector<24x28xf32>, vector<28x144xf32>, vector<24x144xf32> -> vector<24x144xf32>
    %125 = vector.extract_strided_slice %120 {offsets = [1, 0], sizes = [24, 28], strides = [1, 1]} : vector<28x28xf32> to vector<24x28xf32>
    %126 = vector.extract_strided_slice %0 {offsets = [1, 0, 0], sizes = [1, 28, 144], strides = [1, 1, 1]} : vector<5x28x144xf32> to vector<1x28x144xf32>
    %127 = vector.shape_cast %126 : vector<1x28x144xf32> to vector<28x144xf32>
    %cst_62 = arith.constant dense<0.000000e+00> : vector<24x144xf32>
    %128 = tpu.matmul %125, %127, %cst_62 {dimension_numbers = #tpu.dot_dimension_numbers<[1], [0], [0], [1], [0, 0, 1, 1], [], []>} : vector<24x28xf32>, vector<28x144xf32>, vector<24x144xf32> -> vector<24x144xf32>
    %129 = arith.addf %124, %128 : vector<24x144xf32>
    %130 = vector.extract_strided_slice %120 {offsets = [2, 0], sizes = [24, 28], strides = [1, 1]} : vector<28x28xf32> to vector<24x28xf32>
    %131 = vector.extract_strided_slice %0 {offsets = [2, 0, 0], sizes = [1, 28, 144], strides = [1, 1, 1]} : vector<5x28x144xf32> to vector<1x28x144xf32>
    %132 = vector.shape_cast %131 : vector<1x28x144xf32> to vector<28x144xf32>
    %cst_63 = arith.constant dense<0.000000e+00> : vector<24x144xf32>
    %133 = tpu.matmul %130, %132, %cst_63 {dimension_numbers = #tpu.dot_dimension_numbers<[1], [0], [0], [1], [0, 0, 1, 1], [], []>} : vector<24x28xf32>, vector<28x144xf32>, vector<24x144xf32> -> vector<24x144xf32>
    %134 = arith.addf %129, %133 : vector<24x144xf32>
    %135 = vector.extract_strided_slice %120 {offsets = [3, 0], sizes = [24, 28], strides = [1, 1]} : vector<28x28xf32> to vector<24x28xf32>
    %136 = vector.extract_strided_slice %0 {offsets = [3, 0, 0], sizes = [1, 28, 144], strides = [1, 1, 1]} : vector<5x28x144xf32> to vector<1x28x144xf32>
    %137 = vector.shape_cast %136 : vector<1x28x144xf32> to vector<28x144xf32>
    %cst_64 = arith.constant dense<0.000000e+00> : vector<24x144xf32>
    %138 = tpu.matmul %135, %137, %cst_64 {dimension_numbers = #tpu.dot_dimension_numbers<[1], [0], [0], [1], [0, 0, 1, 1], [], []>} : vector<24x28xf32>, vector<28x144xf32>, vector<24x144xf32> -> vector<24x144xf32>
    %139 = arith.addf %134, %138 : vector<24x144xf32>
    %140 = vector.extract_strided_slice %120 {offsets = [4, 0], sizes = [24, 28], strides = [1, 1]} : vector<28x28xf32> to vector<24x28xf32>
    %141 = vector.extract_strided_slice %0 {offsets = [4, 0, 0], sizes = [1, 28, 144], strides = [1, 1, 1]} : vector<5x28x144xf32> to vector<1x28x144xf32>
    %142 = vector.shape_cast %141 : vector<1x28x144xf32> to vector<28x144xf32>
    %cst_65 = arith.constant dense<0.000000e+00> : vector<24x144xf32>
    %143 = tpu.matmul %140, %142, %cst_65 {dimension_numbers = #tpu.dot_dimension_numbers<[1], [0], [0], [1], [0, 0, 1, 1], [], []>} : vector<24x28xf32>, vector<28x144xf32>, vector<24x144xf32> -> vector<24x144xf32>
    %144 = arith.addf %139, %143 : vector<24x144xf32>
    %145 = vector.broadcast %1 : vector<1x144xf32> to vector<24x144xf32>
    %146 = arith.addf %144, %145 : vector<24x144xf32>
    %cst_66 = arith.constant 0.000000e+00 : f32
    %147 = vector.broadcast %cst_66 : f32 to vector<24x144xf32>
    %148 = arith.maximumf %146, %147 : vector<24x144xf32>
    %149 = vector.extract_strided_slice %148 {offsets = [0, 0], sizes = [24, 143], strides = [1, 1]} : vector<24x144xf32> to vector<24x143xf32>
    %150 = vector.extract_strided_slice %148 {offsets = [0, 1], sizes = [24, 143], strides = [1, 1]} : vector<24x144xf32> to vector<24x143xf32>
    %151 = arith.maximumf %149, %150 : vector<24x143xf32>
    %cst_67 = arith.constant dense<0.000000e+00> : vector<24x72xf32>
    %152 = tpu.matmul %151, %2, %cst_67 {dimension_numbers = #tpu.dot_dimension_numbers<[1], [0], [0], [1], [0, 0, 1, 1], [], []>} : vector<24x143xf32>, vector<143x72xf32>, vector<24x72xf32> -> vector<24x72xf32>
    %153 = vector.extract_strided_slice %152 {offsets = [0, 0], sizes = [23, 72], strides = [1, 1]} : vector<24x72xf32> to vector<23x72xf32>
    %154 = vector.extract_strided_slice %152 {offsets = [1, 0], sizes = [23, 72], strides = [1, 1]} : vector<24x72xf32> to vector<23x72xf32>
    %155 = arith.maximumf %153, %154 : vector<23x72xf32>
    %cst_68 = arith.constant dense<0.000000e+00> : vector<12x72xf32>
    %156 = tpu.matmul %3, %155, %cst_68 {dimension_numbers = #tpu.dot_dimension_numbers<[1], [0], [0], [1], [0, 0, 1, 1], [], []>} : vector<12x23xf32>, vector<23x72xf32>, vector<12x72xf32> -> vector<12x72xf32>
    %157 = vector.extract_strided_slice %156 {offsets = [0, 0], sizes = [8, 72], strides = [1, 1]} : vector<12x72xf32> to vector<8x72xf32>
    %158 = vector.extract_strided_slice %4 {offsets = [0, 0, 0], sizes = [1, 72, 128], strides = [1, 1, 1]} : vector<5x72x128xf32> to vector<1x72x128xf32>
    %159 = vector.shape_cast %158 : vector<1x72x128xf32> to vector<72x128xf32>
    %cst_69 = arith.constant dense<0.000000e+00> : vector<8x128xf32>
    %160 = tpu.matmul %157, %159, %cst_69 {dimension_numbers = #tpu.dot_dimension_numbers<[1], [0], [0], [1], [0, 0, 1, 1], [], []>} : vector<8x72xf32>, vector<72x128xf32>, vector<8x128xf32> -> vector<8x128xf32>
    %161 = vector.extract_strided_slice %156 {offsets = [1, 0], sizes = [8, 72], strides = [1, 1]} : vector<12x72xf32> to vector<8x72xf32>
    %162 = vector.extract_strided_slice %4 {offsets = [1, 0, 0], sizes = [1, 72, 128], strides = [1, 1, 1]} : vector<5x72x128xf32> to vector<1x72x128xf32>
    %163 = vector.shape_cast %162 : vector<1x72x128xf32> to vector<72x128xf32>
    %cst_70 = arith.constant dense<0.000000e+00> : vector<8x128xf32>
    %164 = tpu.matmul %161, %163, %cst_70 {dimension_numbers = #tpu.dot_dimension_numbers<[1], [0], [0], [1], [0, 0, 1, 1], [], []>} : vector<8x72xf32>, vector<72x128xf32>, vector<8x128xf32> -> vector<8x128xf32>
    %165 = arith.addf %160, %164 : vector<8x128xf32>
    %166 = vector.extract_strided_slice %156 {offsets = [2, 0], sizes = [8, 72], strides = [1, 1]} : vector<12x72xf32> to vector<8x72xf32>
    %167 = vector.extract_strided_slice %4 {offsets = [2, 0, 0], sizes = [1, 72, 128], strides = [1, 1, 1]} : vector<5x72x128xf32> to vector<1x72x128xf32>
    %168 = vector.shape_cast %167 : vector<1x72x128xf32> to vector<72x128xf32>
    %cst_71 = arith.constant dense<0.000000e+00> : vector<8x128xf32>
    %169 = tpu.matmul %166, %168, %cst_71 {dimension_numbers = #tpu.dot_dimension_numbers<[1], [0], [0], [1], [0, 0, 1, 1], [], []>} : vector<8x72xf32>, vector<72x128xf32>, vector<8x128xf32> -> vector<8x128xf32>
    %170 = arith.addf %165, %169 : vector<8x128xf32>
    %171 = vector.extract_strided_slice %156 {offsets = [3, 0], sizes = [8, 72], strides = [1, 1]} : vector<12x72xf32> to vector<8x72xf32>
    %172 = vector.extract_strided_slice %4 {offsets = [3, 0, 0], sizes = [1, 72, 128], strides = [1, 1, 1]} : vector<5x72x128xf32> to vector<1x72x128xf32>
    %173 = vector.shape_cast %172 : vector<1x72x128xf32> to vector<72x128xf32>
    %cst_72 = arith.constant dense<0.000000e+00> : vector<8x128xf32>
    %174 = tpu.matmul %171, %173, %cst_72 {dimension_numbers = #tpu.dot_dimension_numbers<[1], [0], [0], [1], [0, 0, 1, 1], [], []>} : vector<8x72xf32>, vector<72x128xf32>, vector<8x128xf32> -> vector<8x128xf32>
    %175 = arith.addf %170, %174 : vector<8x128xf32>
    %176 = vector.extract_strided_slice %156 {offsets = [4, 0], sizes = [8, 72], strides = [1, 1]} : vector<12x72xf32> to vector<8x72xf32>
    %177 = vector.extract_strided_slice %4 {offsets = [4, 0, 0], sizes = [1, 72, 128], strides = [1, 1, 1]} : vector<5x72x128xf32> to vector<1x72x128xf32>
    %178 = vector.shape_cast %177 : vector<1x72x128xf32> to vector<72x128xf32>
    %cst_73 = arith.constant dense<0.000000e+00> : vector<8x128xf32>
    %179 = tpu.matmul %176, %178, %cst_73 {dimension_numbers = #tpu.dot_dimension_numbers<[1], [0], [0], [1], [0, 0, 1, 1], [], []>} : vector<8x72xf32>, vector<72x128xf32>, vector<8x128xf32> -> vector<8x128xf32>
    %180 = arith.addf %175, %179 : vector<8x128xf32>
    %181 = vector.broadcast %5 : vector<1x128xf32> to vector<8x128xf32>
    %182 = arith.addf %180, %181 : vector<8x128xf32>
    %cst_74 = arith.constant 0.000000e+00 : f32
    %183 = vector.broadcast %cst_74 : f32 to vector<8x128xf32>
    %184 = arith.maximumf %182, %183 : vector<8x128xf32>
    %185 = vector.extract_strided_slice %184 {offsets = [0, 0], sizes = [8, 127], strides = [1, 1]} : vector<8x128xf32> to vector<8x127xf32>
    %186 = vector.extract_strided_slice %184 {offsets = [0, 1], sizes = [8, 127], strides = [1, 1]} : vector<8x128xf32> to vector<8x127xf32>
    %187 = arith.maximumf %185, %186 : vector<8x127xf32>
    %cst_75 = arith.constant dense<0.000000e+00> : vector<8x64xf32>
    %188 = tpu.matmul %187, %6, %cst_75 {dimension_numbers = #tpu.dot_dimension_numbers<[1], [0], [0], [1], [0, 0, 1, 1], [], []>} : vector<8x127xf32>, vector<127x64xf32>, vector<8x64xf32> -> vector<8x64xf32>
    %189 = vector.extract_strided_slice %188 {offsets = [0, 0], sizes = [7, 64], strides = [1, 1]} : vector<8x64xf32> to vector<7x64xf32>
    %190 = vector.extract_strided_slice %188 {offsets = [1, 0], sizes = [7, 64], strides = [1, 1]} : vector<8x64xf32> to vector<7x64xf32>
    %191 = arith.maximumf %189, %190 : vector<7x64xf32>
    %cst_76 = arith.constant dense<0.000000e+00> : vector<4x64xf32>
    %192 = tpu.matmul %7, %191, %cst_76 {dimension_numbers = #tpu.dot_dimension_numbers<[1], [0], [0], [1], [0, 0, 1, 1], [], []>} : vector<4x7xf32>, vector<7x64xf32>, vector<4x64xf32> -> vector<4x64xf32>
    %193 = vector.extract_strided_slice %192 {offsets = [0, 0], sizes = [1, 64], strides = [1, 1]} : vector<4x64xf32> to vector<1x64xf32>
    %194 = vector.extract_strided_slice %8 {offsets = [0, 0, 0], sizes = [1, 64, 120], strides = [1, 1, 1]} : vector<4x64x120xf32> to vector<1x64x120xf32>
    %195 = vector.shape_cast %194 : vector<1x64x120xf32> to vector<64x120xf32>
    %cst_77 = arith.constant dense<0.000000e+00> : vector<1x120xf32>
    %196 = tpu.matmul %193, %195, %cst_77 {dimension_numbers = #tpu.dot_dimension_numbers<[1], [0], [0], [1], [0, 0, 1, 1], [], []>} : vector<1x64xf32>, vector<64x120xf32>, vector<1x120xf32> -> vector<1x120xf32>
    %197 = arith.addf %9, %196 : vector<1x120xf32>
    %198 = vector.extract_strided_slice %192 {offsets = [1, 0], sizes = [1, 64], strides = [1, 1]} : vector<4x64xf32> to vector<1x64xf32>
    %199 = vector.extract_strided_slice %8 {offsets = [1, 0, 0], sizes = [1, 64, 120], strides = [1, 1, 1]} : vector<4x64x120xf32> to vector<1x64x120xf32>
    %200 = vector.shape_cast %199 : vector<1x64x120xf32> to vector<64x120xf32>
    %cst_78 = arith.constant dense<0.000000e+00> : vector<1x120xf32>
    %201 = tpu.matmul %198, %200, %cst_78 {dimension_numbers = #tpu.dot_dimension_numbers<[1], [0], [0], [1], [0, 0, 1, 1], [], []>} : vector<1x64xf32>, vector<64x120xf32>, vector<1x120xf32> -> vector<1x120xf32>
    %202 = arith.addf %197, %201 : vector<1x120xf32>
    %203 = vector.extract_strided_slice %192 {offsets = [2, 0], sizes = [1, 64], strides = [1, 1]} : vector<4x64xf32> to vector<1x64xf32>
    %204 = vector.extract_strided_slice %8 {offsets = [2, 0, 0], sizes = [1, 64, 120], strides = [1, 1, 1]} : vector<4x64x120xf32> to vector<1x64x120xf32>
    %205 = vector.shape_cast %204 : vector<1x64x120xf32> to vector<64x120xf32>
    %cst_79 = arith.constant dense<0.000000e+00> : vector<1x120xf32>
    %206 = tpu.matmul %203, %205, %cst_79 {dimension_numbers = #tpu.dot_dimension_numbers<[1], [0], [0], [1], [0, 0, 1, 1], [], []>} : vector<1x64xf32>, vector<64x120xf32>, vector<1x120xf32> -> vector<1x120xf32>
    %207 = arith.addf %202, %206 : vector<1x120xf32>
    %208 = vector.extract_strided_slice %192 {offsets = [3, 0], sizes = [1, 64], strides = [1, 1]} : vector<4x64xf32> to vector<1x64xf32>
    %209 = vector.extract_strided_slice %8 {offsets = [3, 0, 0], sizes = [1, 64, 120], strides = [1, 1, 1]} : vector<4x64x120xf32> to vector<1x64x120xf32>
    %210 = vector.shape_cast %209 : vector<1x64x120xf32> to vector<64x120xf32>
    %cst_80 = arith.constant dense<0.000000e+00> : vector<1x120xf32>
    %211 = tpu.matmul %208, %210, %cst_80 {dimension_numbers = #tpu.dot_dimension_numbers<[1], [0], [0], [1], [0, 0, 1, 1], [], []>} : vector<1x64xf32>, vector<64x120xf32>, vector<1x120xf32> -> vector<1x120xf32>
    %212 = arith.addf %207, %211 : vector<1x120xf32>
    %cst_81 = arith.constant 0.000000e+00 : f32
    %213 = vector.broadcast %cst_81 : f32 to vector<1x120xf32>
    %214 = arith.maximumf %212, %213 : vector<1x120xf32>
    %cst_82 = arith.constant dense<0.000000e+00> : vector<1x84xf32>
    %215 = tpu.matmul %214, %10, %cst_82 {dimension_numbers = #tpu.dot_dimension_numbers<[1], [0], [0], [1], [0, 0, 1, 1], [], []>} : vector<1x120xf32>, vector<120x84xf32>, vector<1x84xf32> -> vector<1x84xf32>
    %216 = arith.addf %215, %11 : vector<1x84xf32>
    %cst_83 = arith.constant 0.000000e+00 : f32
    %217 = vector.broadcast %cst_83 : f32 to vector<1x84xf32>
    %218 = arith.maximumf %216, %217 : vector<1x84xf32>
    %cst_84 = arith.constant dense<0.000000e+00> : vector<1x10xf32>
    %219 = tpu.matmul %218, %12, %cst_84 {dimension_numbers = #tpu.dot_dimension_numbers<[1], [0], [0], [1], [0, 0, 1, 1], [], []>} : vector<1x84xf32>, vector<84x10xf32>, vector<1x10xf32> -> vector<1x10xf32>
    %220 = arith.addf %219, %13 : vector<1x10xf32>
    %c1_85 = arith.constant 1 : index
    %c0_86 = arith.constant 0 : index
    %c0_87 = arith.constant 0 : index
    %221 = vector.load %arg16[%c1_85, %c0_86, %c0_87] : memref<2x1x10xf32, #tpu.memory_space<vmem>>, vector<1x1x10xf32>
    %222 = vector.shape_cast %221 : vector<1x1x10xf32> to vector<1x10xf32>
    %223 = vector.shape_cast %220 : vector<1x10xf32> to vector<1x1x10xf32>
    tpu.vector_store %arg16[%c1_85, %c0_86, %c0_87], %223 {strides = array<i32>} : memref<2x1x10xf32, #tpu.memory_space<vmem>>, vector<1x1x10xf32>,
    return
  }
  func.func @transform_0(%arg0: i32) -> (i32, i32, i32) {
    %c0_i32 = arith.constant 0 : i32
    %c0_i32_0 = arith.constant 0 : i32
    %c0_i32_1 = arith.constant 0 : i32
    return %arg0, %c0_i32, %c0_i32_0 : i32, i32, i32
  }
  func.func @transform_1(%arg0: i32) -> (i32, i32, i32) {
    %c0_i32 = arith.constant 0 : i32
    %c0_i32_0 = arith.constant 0 : i32
    %c0_i32_1 = arith.constant 0 : i32
    %c0_i32_2 = arith.constant 0 : i32
    return %c0_i32, %c0_i32_0, %c0_i32_1 : i32, i32, i32
  }
  func.func @transform_2(%arg0: i32) -> (i32, i32) {
    %c0_i32 = arith.constant 0 : i32
    %c0_i32_0 = arith.constant 0 : i32
    %c0_i32_1 = arith.constant 0 : i32
    return %c0_i32, %c0_i32_0 : i32, i32
  }
  func.func @transform_3(%arg0: i32) -> (i32, i32) {
    %c0_i32 = arith.constant 0 : i32
    %c0_i32_0 = arith.constant 0 : i32
    %c0_i32_1 = arith.constant 0 : i32
    return %c0_i32, %c0_i32_0 : i32, i32
  }
  func.func @transform_4(%arg0: i32) -> (i32, i32) {
    %c0_i32 = arith.constant 0 : i32
    %c0_i32_0 = arith.constant 0 : i32
    %c0_i32_1 = arith.constant 0 : i32
    return %c0_i32, %c0_i32_0 : i32, i32
  }
  func.func @transform_5(%arg0: i32) -> (i32, i32, i32) {
    %c0_i32 = arith.constant 0 : i32
    %c0_i32_0 = arith.constant 0 : i32
    %c0_i32_1 = arith.constant 0 : i32
    %c0_i32_2 = arith.constant 0 : i32
    return %c0_i32, %c0_i32_0, %c0_i32_1 : i32, i32, i32
  }
  func.func @transform_6(%arg0: i32) -> (i32, i32) {
    %c0_i32 = arith.constant 0 : i32
    %c0_i32_0 = arith.constant 0 : i32
    %c0_i32_1 = arith.constant 0 : i32
    return %c0_i32, %c0_i32_0 : i32, i32
  }
  func.func @transform_7(%arg0: i32) -> (i32, i32) {
    %c0_i32 = arith.constant 0 : i32
    %c0_i32_0 = arith.constant 0 : i32
    %c0_i32_1 = arith.constant 0 : i32
    return %c0_i32, %c0_i32_0 : i32, i32
  }
  func.func @transform_8(%arg0: i32) -> (i32, i32) {
    %c0_i32 = arith.constant 0 : i32
    %c0_i32_0 = arith.constant 0 : i32
    %c0_i32_1 = arith.constant 0 : i32
    return %c0_i32, %c0_i32_0 : i32, i32
  }
  func.func @transform_9(%arg0: i32) -> (i32, i32, i32) {
    %c0_i32 = arith.constant 0 : i32
    %c0_i32_0 = arith.constant 0 : i32
    %c0_i32_1 = arith.constant 0 : i32
    %c0_i32_2 = arith.constant 0 : i32
    return %c0_i32, %c0_i32_0, %c0_i32_1 : i32, i32, i32
  }
  func.func @transform_10(%arg0: i32) -> (i32, i32) {
    %c0_i32 = arith.constant 0 : i32
    %c0_i32_0 = arith.constant 0 : i32
    %c0_i32_1 = arith.constant 0 : i32
    return %c0_i32, %c0_i32_0 : i32, i32
  }
  func.func @transform_11(%arg0: i32) -> (i32, i32) {
    %c0_i32 = arith.constant 0 : i32
    %c0_i32_0 = arith.constant 0 : i32
    %c0_i32_1 = arith.constant 0 : i32
    return %c0_i32, %c0_i32_0 : i32, i32
  }
  func.func @transform_12(%arg0: i32) -> (i32, i32) {
    %c0_i32 = arith.constant 0 : i32
    %c0_i32_0 = arith.constant 0 : i32
    %c0_i32_1 = arith.constant 0 : i32
    return %c0_i32, %c0_i32_0 : i32, i32
  }
  func.func @transform_13(%arg0: i32) -> (i32, i32) {
    %c0_i32 = arith.constant 0 : i32
    %c0_i32_0 = arith.constant 0 : i32
    %c0_i32_1 = arith.constant 0 : i32
    return %c0_i32, %c0_i32_0 : i32, i32
  }
  func.func @transform_14(%arg0: i32) -> (i32, i32) {
    %c0_i32 = arith.constant 0 : i32
    %c0_i32_0 = arith.constant 0 : i32
    %c0_i32_1 = arith.constant 0 : i32
    return %c0_i32, %c0_i32_0 : i32, i32
  }
  func.func @transform_15(%arg0: i32) -> (i32, i32, i32) {
    %c0_i32 = arith.constant 0 : i32
    %c0_i32_0 = arith.constant 0 : i32
    %c0_i32_1 = arith.constant 0 : i32
    return %arg0, %c0_i32, %c0_i32_0 : i32, i32, i32
  }
}

</mosaic_0001>

<bundles_post_ra>
// kernel: lenet_forward.1
= control target key start
LH: loop header
LB: loop body
LE: loop exit
PB: predicated region body
PF: predicated region fallthrough
CT: control target
= control target key end

     0   :  { %20 = vsyncpa [#allocation3], 0  ;;  %s6947_s0 = inlined_call_operand.vmem [shape: f32[2,28,28], index: 0, kind: input, shape index: {}]   ;;  %s6948_s1 = inlined_call_operand.vmem [shape: f32[5,28,144], index: 1, kind: input, shape index: {}]   ;;  %s6949_s2 = inlined_call_operand.vmem [shape: f32[1,144], index: 2, kind: input, shape index: {}]   ;;  %s6950_s3 = inlined_call_operand.hbm [shape: f32[143,72], index: 3, kind: input, shape index: {}]   ;;  %s6951_s4 = inlined_call_operand.vmem [shape: f32[12,23], index: 4, kind: input, shape index: {}]   ;;  %s6952_s5 = inlined_call_operand.vmem [shape: f32[5,72,128], index: 5, kind: input, shape index: {}]   ;;  %s6953_s6 = inlined_call_operand.vmem [shape: f32[1,128], index: 6, kind: input, shape index: {}]   ;;  %s6954_s7 = inlined_call_operand.vmem [shape: f32[127,64], index: 7, kind: input, shape index: {}]   ;;  %s6955_s8 = inlined_call_operand.vmem [shape: f32[4,7], index: 8, kind: input, shape index: {}]   ;;  %s6956_s9 = inlined_call_operand.hbm [shape: f32[4,64,120], index: 9, kind: input, shape index: {}]   ;;  %s6957_s10 = inlined_call_operand.hbm [shape: f32[1,120], index: 10, kind: input, shape index: {}]   ;;  %s6958_s11 = inlined_call_operand.vmem [shape: f32[120,84], index: 11, kind: input, shape index: {}]   ;;  %s6959_s12 = inlined_call_operand.hbm [shape: f32[1,84], index: 12, kind: input, shape index: {}]   ;;  %s6960_s13 = inlined_call_operand.vmem [shape: f32[84,10], index: 13, kind: input, shape index: {}]   ;;  %s6961_s14 = inlined_call_operand.vmem [shape: f32[1,10], index: 14, kind: input, shape index: {}]   ;;  %s6962_s15 = inlined_call_operand.hbm [shape: f32[2,1,10], index: 15, kind: output, shape index: {}]  }
   0x1   :  { %21 = vsyncpa [#allocation6], 0 }
   0x2   :  { %22 = vsyncpa [#allocation9], 0 }
   0x3   :  { %23 = vsyncpa [#allocation4], 0  ;;  %s5447_s18 = smov [#allocation5]   ;;  %s5448_s20 = smov [#allocation2]  }
   0x4   :  { %s57_s19 = sshll.u32 %s5447_s18, 4  ;;  %s35_s21 = sshll.u32 %s5448_s20, 4  ;;  %s58_s19 = int_to_ptr.vmem [resolvable:$true] %s57_s19  ;;  %s5541_s21 = int_to_ptr.vmem [resolvable:$true] %s35_s21 }
   0x5   :  { %s5329_s24 = scalar_lea.hbm %s6956_s9, 4096 }
   0x6   :  { %p5330_p0 = scmp.ne.s32.totalorder %s6956_s9, %s5329_s24  ;;  %p5333_p1 = scmp.lt.u32.totalorder %s5329_s24, %s6956_s9 }
   0x8   :  { %p5335_p2 = pnand %p5333_p1, %p5330_p0 }
   0xa   :  { %5338 = shalt.err (!%p5335_p2)
}
   0xb   :  { %s5339_s29 = scalar_lea.vmem %s58_s19, 4096  ;;  %p5344_p4 = scmp.lt.s32.totalorder %s58_s19, %s58_s19 }
   0xc   :  { %p5340_p3 = scmp.ne.s32.totalorder %s58_s19, %s5339_s29  ;;  %p5345_p5 = scmp.lt.s32.totalorder %s5339_s29, %s5339_s29 }
   0xe   :  { %p5346_p6 = por %p5345_p5, %p5344_p4 }
  0x10   :  { %p5347_p7 = pnand %p5346_p6, %p5340_p3 }
  0x12   :  { %5350 = shalt.err (!%p5347_p7)
}
  0x13   :  { %s5449_s30 = smov 128   ;;  %s5450_s16 = smov 8  }
  0x14   :  { %63 = dma.hbm_to_vmem [thread:$0]  %s6956_s9, 4096, %s58_s19, [#allocation6], %s5449_s30, %s5449_s30, %s5450_s16  }
  0x15   :  { %s5351_s23 = scalar_lea.hbm %s6950_s3, 2304 }
  0x16   :  { %p5352_p8 = scmp.ne.s32.totalorder %s6950_s3, %s5351_s23  ;;  %p5355_p9 = scmp.lt.u32.totalorder %s5351_s23, %s6950_s3 }
  0x18   :  { %p5357_p10 = pnand %p5355_p9, %p5352_p8 }
  0x1a   :  { %5360 = shalt.err (!%p5357_p10)
}
  0x1b   :  { %s5361_s28 = scalar_lea.vmem %s5541_s21, 2304  ;;  %p5366_p12 = scmp.lt.s32.totalorder %s5541_s21, %s5541_s21 }
  0x1c   :  { %p5362_p11 = scmp.ne.s32.totalorder %s5541_s21, %s5361_s28  ;;  %p5367_p13 = scmp.lt.s32.totalorder %s5361_s28, %s5361_s28 }
  0x1e   :  { %p5368_p0 = por %p5367_p13, %p5366_p12 }
  0x20   :  { %p5369_p1 = pnand %p5368_p0, %p5362_p11 }
  0x22   :  { %5372 = shalt.err (!%p5369_p1)
}
  0x23   :  { %41 = dma.hbm_to_vmem [thread:$0]  %s6950_s3, 2304, %s5541_s21, [#allocation3], %s5449_s30, %s5449_s30, %s5450_s16  }
  0x24   :  { %s5451_s29 = smov [#allocation7]   ;;  %s5452_s18 = smov [#allocation8]  }
  0x25   :  { %s70_s17 = sshll.u32 %s5451_s29, 4  ;;  %s82_s20 = sshll.u32 %s5452_s18, 4  ;;  %s71_s17 = int_to_ptr.vmem [resolvable:$true] %s70_s17  ;;  %s83_s20 = int_to_ptr.vmem [resolvable:$true] %s82_s20 }
  0x26   :  { %s5373_s24 = scalar_lea.hbm %s6957_s10, 16 }
  0x27   :  { %p5374_p2 = scmp.ne.s32.totalorder %s6957_s10, %s5373_s24  ;;  %p5377_p3 = scmp.lt.u32.totalorder %s5373_s24, %s6957_s10 }
  0x29   :  { %p5379_p4 = pnand %p5377_p3, %p5374_p2 }
  0x2b   :  { %5382 = shalt.err (!%p5379_p4)
}
  0x2c   :  { %s5383_s3 = scalar_lea.vmem %s71_s17, 16  ;;  %s5387_s21 = scalar_lea.vmem %s71_s17, 32 }
  0x2d   :  { %p5384_p5 = scmp.ne.s32.totalorder %s71_s17, %s5383_s3  ;;  %p5388_p6 = scmp.lt.s32.totalorder %s71_s17, %s71_s17 }
  0x2e   :  { %p5389_p7 = scmp.lt.s32.totalorder %s5387_s21, %s5383_s3 }
  0x30   :  { %p5390_p8 = por %p5389_p7, %p5388_p6 }
  0x32   :  { %p5391_p9 = pnand %p5390_p8, %p5384_p5 }
  0x34   :  { %5394 = shalt.err (!%p5391_p9)
}
  0x35   :  { %73 = dma.hbm_to_vmem [thread:$0]  %s6957_s10, 16, %s71_s17, [#allocation6]  }
  0x36   :  { %s5395_s29 = scalar_lea.hbm %s6959_s12, 16 }
  0x37   :  { %p5396_p10 = scmp.ne.s32.totalorder %s6959_s12, %s5395_s29  ;;  %p5399_p11 = scmp.lt.u32.totalorder %s5395_s29, %s6959_s12 }
  0x39   :  { %p5401_p12 = pnand %p5399_p11, %p5396_p10 }
  0x3b   :  { %5404 = shalt.err (!%p5401_p12)
}
  0x3c   :  { %s5405_s25 = scalar_lea.vmem %s83_s20, 16  ;;  %s5409_s26 = scalar_lea.vmem %s83_s20, 32 }
  0x3d   :  { %p5406_p13 = scmp.ne.s32.totalorder %s83_s20, %s5405_s25  ;;  %p5410_p0 = scmp.lt.s32.totalorder %s83_s20, %s83_s20 }
  0x3e   :  { %p5411_p1 = scmp.lt.s32.totalorder %s5409_s26, %s5405_s25 }
  0x40   :  { %p5412_p2 = por %p5411_p1, %p5410_p0 }
  0x42   :  { %p5413_p3 = pnand %p5412_p2, %p5406_p13 }
  0x44   :  { %5416 = shalt.err (!%p5413_p3)
}
  0x45   :  { %85 = dma.hbm_to_vmem [thread:$0]  %s6959_s12, 16, %s83_s20, [#allocation9]  }
  0x46   :  { %5439 = dma.done.wait [#allocation3], 2304  }
  0x47   :  { %5440 = vsyncadd [#allocation3], 4294964992 }
  0x48   :  { %5441 = dma.done.wait [#allocation6], 4112  }
  0x49   :  { %5442 = vsyncadd [#allocation6], 4294963184 }
  0x4a   :  { %5443 = dma.done.wait [#allocation9], 16  }
  0x4b   :  { %5444 = vsyncadd [#allocation9], 4294967280  ;;  %v6963_v0 = vmov 0.0   ;;  %vm310_vm0 = vcmask 1043456   ;;  %vm5454_vm1 = vmmov 1   ;;  %v111_v2 = vld [vmem:[%s6948_s1 + $0x48] sm:$0xff] }
  0x4c   :  { %381 = vmatprep.mubr.f32.mxu0 %v6963_v0  ;;  %vm5599_vm2 = vmpackc.low %vm310_vm0, %vm5454_vm1  ;;  %v113_v3 = vld [vmem:[%s6948_s1 + $0x58] sm:$0xff]  ;;  %v110_v4 = vld [vmem:[%s6948_s1 + $0x40] sm:$0xff]  ;;  %vm295_vm3 = vcmask 1046528   ;;  %vm303_vm4 = vcmask 228352   ;;  %vm495_vm5 = vcmask 1045504   ;;  %vm604_vm6 = vcmask 1044480  }
  0x4d   :  { %v5612_v5 = vpack.c.bf16 %v113_v3, %v111_v2  ;;  %v112_v6 = vld [vmem:[%s6948_s1 + $0x50] sm:$0xff]  ;;  %v115_v7 = vld [vmem:[%s6948_s1 + $0x68] sm:$0xff]  ;;  %v117_v8 = vld [vmem:[%s6948_s1 + $0x78] sm:$0xf]  ;;  %vm862_vm8 = vcmask 1039360   ;;  %vm878_vm9 = vcmask 121856  }
  0x4e   :  { %v5623_v9 = vpack.c.bf16 %v112_v6, %v110_v4  ;;  %v5625_v10 = vpack.c.bf16 %v117_v8, %v115_v7  ;;  %v114_v11 = vld [vmem:[%s6948_s1 + $0x60] sm:$0xff]  ;;  %v116_v12 = vld [vmem:[%s6948_s1 + $0x70] sm:$0xf]  ;;  %v5642_v14 = vld [vmem:[%s6947_s0 + $0x8] sm:$0xff]  ;;  %vm985_vm10 = vcmask 187392   ;;  %vm5457_vm11 = vmmov 0  }
  0x4f   :  { %v5636_v13 = vld [vmem:[%s6947_s0] sm:$0xff]  ;;  %4749 = vmatprep.subr.bf16.mxu0 %v5612_v5  ;;  %v103_v15 = vld [vmem:[%s6948_s1 + $0x8] sm:$0xff]  ;;  %v5648_v16 = vpack.c.bf16 %v116_v12, %v114_v11  ;;  %v297_v18 = vrot.slane %v5642_v14, 1  ;;  %v105_v19 = vld [vmem:[%s6948_s1 + $0x18] sm:$0xff]  ;;  %v497_v53 = vrot.slane %v5642_v14, 2  ;;  %vm1075_vm12 = vcmask 588800  }
  0x50   :  { %4751 = vmatpush1.bf16.msra.mxu0 %v5623_v9  ;;  %v296_v17 = vrot.slane %v5636_v13, 1  ;;  %v5661_v20 = vld [vmem:[%s6947_s0 + $0x10] sm:$0xff]  ;;  %v5663_v21 = vpack.c.bf16 %v105_v19, %v103_v15  ;;  %v102_v22 = vld [vmem:[%s6948_s1] sm:$0xff]  ;;  %v107_v24 = vld [vmem:[%s6948_s1 + $0x28] sm:$0xff]  ;;  %v496_v52 = vrot.slane %v5636_v13, 2  ;;  %v605_v12 = vrot.slane %v5636_v13, 3 }
  0x51   :  { %4754 = vmatprep.subr.msk.bf16.mxu0 %vm5599_vm2, %v5625_v10  ;;  %v104_v23 = vld [vmem:[%s6948_s1 + $0x10] sm:$0xff]  ;;  %v109_v25 = vld [vmem:[%s6948_s1 + $0x38] sm:$0xf]  ;;  %v299_v27 = vrot.slane %v5661_v20, 1  ;;  %v106_v31 = vld [vmem:[%s6948_s1 + $0x20] sm:$0xff]  ;;  %v499_v59 = vrot.slane %v5661_v20, 2 }
  0x52   :  { %v298_v26 = vsel %vm295_vm3, %v296_v17, %v297_v18  ;;  %v5682_v28 = vpack.c.bf16 %v104_v23, %v102_v22  ;;  %v5688_v29 = vld [vmem:[%s6947_s0 + $0x18] sm:$0xf]  ;;  %v5690_v30 = vpack.c.bf16 %v109_v25, %v107_v24  ;;  %v108_v32 = vld [vmem:[%s6948_s1 + $0x30] sm:$0xf]  ;;  %v119_v33 = vld [vmem:[%s6948_s1 + $0x88] sm:$0xff]  ;;  %v498_v58 = vsel %vm495_vm5, %v496_v52, %v497_v53 }
  0x53   :  { %v121_v34 = vld [vmem:[%s6948_s1 + $0x98] sm:$0xff]  ;;  %v300_v35 = vsel %vm295_vm3, %v297_v18, %v299_v27  ;;  %v301_v36 = vrot.slane %v5688_v29, 1  ;;  %v5709_v37 = vpack.c.bf16 %v108_v32, %v106_v31  ;;  %v118_v40 = vld [vmem:[%s6948_s1 + $0x80] sm:$0xff]  ;;  %v120_v41 = vld [vmem:[%s6948_s1 + $0x90] sm:$0xff]  ;;  %v500_v4 = vsel %vm495_vm5, %v497_v53, %v499_v59 }
  0x54   :  { %4757 = vmatpush1.bf16.msk.msra.mxu0 %vm5599_vm2, %v5648_v16  ;;  %v5714_v38 = vpack.c.bf16 %v121_v34, %v119_v33  ;;  %v123_v42 = vld [vmem:[%s6948_s1 + $0xa8] sm:$0xff]  ;;  %v125_v43 = vld [vmem:[%s6948_s1 + $0xb8] sm:$0xf]  ;;  %v5737_v44 = vpack.c.bf16 %v120_v41, %v118_v40  ;;  %v122_v46 = vld [vmem:[%s6948_s1 + $0xa0] sm:$0xff]  ;;  %v501_v6 = vrot.slane %v5688_v29, 2  ;;  %v606_v15 = vrot.slane %v5642_v14, 3 }
  0x55   :  { %4759 = vmatprep.subr.bf16.mxu0 %v5663_v21  ;;  %v302_v39 = vsel %vm295_vm3, %v299_v27, %v301_v36  ;;  %v5739_v45 = vpack.c.bf16 %v125_v43, %v123_v42  ;;  %v124_v47 = vld [vmem:[%s6948_s1 + $0xb0] sm:$0xf]  ;;  %v127_v48 = vld [vmem:[%s6948_s1 + $0xc8] sm:$0xff]  ;;  %v129_v49 = vld [vmem:[%s6948_s1 + $0xd8] sm:$0xff]  ;;  %v608_v24 = vrot.slane %v5661_v20, 3  ;;  %v610_v33 = vrot.slane %v5688_v29, 3 }
  0x56   :  { %v5757_v50 = vpack.c.bf16 %v124_v47, %v122_v46  ;;  %v5762_v51 = vpack.c.bf16 %v129_v49, %v127_v48  ;;  %v126_v54 = vld [vmem:[%s6948_s1 + $0xc0] sm:$0xff]  ;;  %v128_v55 = vld [vmem:[%s6948_s1 + $0xd0] sm:$0xff]  ;;  %v131_v56 = vld [vmem:[%s6948_s1 + $0xe8] sm:$0xff]  ;;  %v502_v11 = vsel %vm495_vm5, %v499_v59, %v501_v6  ;;  %v607_v23 = vsel %vm604_vm6, %v605_v12, %v606_v15 }
  0x57   :  { %3797 = vmatmul.mubr.msk.f32.vlgmr.msra.gmra.mrb[0].mxu0 %vm303_vm4, %v298_v26  ;;  %v133_v57 = vld [vmem:[%s6948_s1 + $0xf8] sm:$0xf]  ;;  %v5790_v60 = vpack.c.bf16 %v128_v55, %v126_v54  ;;  %v130_v62 = vld [vmem:[%s6948_s1 + $0xe0] sm:$0xff]  ;;  %v132_v63 = vld [vmem:[%s6948_s1 + $0xf0] sm:$0xf]  ;;  %v609_v32 = vsel %vm604_vm6, %v606_v15, %v608_v24  ;;  %v713_v36 = vrot.slane %v5636_v13, 4  ;;  %v822_v12 = vlaneseq }
  0x58   :  { %387 = vmatprep.mubr.f32.mxu0 %v6963_v0  ;;  %4761 = vmatpush1.bf16.msra.mxu0 %v5682_v28  ;;  %v5792_v61 = vpack.c.bf16 %v133_v57, %v131_v56  ;;  %v135_v2 = vld [vmem:[%s6948_s1 + $0x108] sm:$0xff]  ;;  %v137_v3 = vld [vmem:[%s6948_s1 + $0x118] sm:$0xff]  ;;  %v5811_v7 = vpack.c.bf16 %v132_v63, %v130_v62  ;;  %v134_v17 = vld [vmem:[%s6948_s1 + $0x100] sm:$0xff]  ;;  %v716_v41 = vrot.slane %v5661_v20, 4  ;;  %v718_v43 = vrot.slane %v5688_v29, 4 }
  0x59   :  { %4764 = vmatprep.subr.msk.bf16.mxu0 %vm5599_vm2, %v5690_v30  ;;  %v5816_v8 = vpack.c.bf16 %v137_v3, %v135_v2  ;;  %v136_v18 = vld [vmem:[%s6948_s1 + $0x110] sm:$0xff]  ;;  %v139_v19 = vld [vmem:[%s6948_s1 + $0x128] sm:$0xff]  ;;  %v141_v22 = vld [vmem:[%s6948_s1 + $0x138] sm:$0xf]  ;;  %v823_v15 = vshrl.u32 %v822_v12, 7  ;;  %vm1541_vm13 = vcmask 56320  }
  0x5a   :  { %v5843_v25 = vpack.c.bf16 %v136_v18, %v134_v17  ;;  %v5845_v26 = vpack.c.bf16 %v141_v22, %v139_v19  ;;  %v138_v27 = vld [vmem:[%s6948_s1 + $0x120] sm:$0xff]  ;;  %v140_v31 = vld [vmem:[%s6948_s1 + $0x130] sm:$0xf]  ;;  %v144_v46 = vld [vmem:[#allocation2 + $0x8] sm:$0xff]  ;;  %vm1618_vm14 = vcmask 523264   ;;  %vm1916_vm15 = vcmask 982016  }
  0x5b   :  { %3798 = vmatmul.mubr.msk.f32.gmra.mrb[2].mxu0 %vm303_vm4, %v300_v35  ;;  %v5858_v34 = vpack.c.bf16 %v140_v31, %v138_v27  ;;  %v611_v35 = vsel %vm604_vm6, %v608_v24, %v610_v33  ;;  %v145_v47 = vld [vmem:[#allocation2 + $0x10] sm:$0xff]  ;;  %v146_v49 = vld [vmem:[#allocation2 + $0x18] sm:$0xff]  ;;  %v147_v52 = vld [vmem:[#allocation2 + $0x20] sm:$0xff]  ;;  %v824_v22 = vsub.s32 0, %v823_v15 }
  0x5c   :  { %393 = vmatprep.mubr.f32.mxu0 %v6963_v0  ;;  %4767 = vmatpush1.bf16.msk.msra.mxu0 %vm5599_vm2, %v5709_v37  ;;  %v5888_v29 = vpack.c.bf16 %v146_v49, %v145_v47  ;;  %v148_v53 = vld [vmem:[#allocation2 + $0x28] sm:$0xff]  ;;  %v149_v55 = vld [vmem:[#allocation2 + $0x30] sm:$0xff]  ;;  %v150_v56 = vld [vmem:[#allocation2 + $0x38] sm:$0xff] }
  0x5d   :  { %4769 = vmatprep.subr.bf16.mxu0 %v5714_v38  ;;  %v5892_v54 = vpack.c.bf16 %v148_v53, %v147_v52  ;;  %v5896_v57 = vpack.c.bf16 %v150_v56, %v149_v55  ;;  %v152_v59 = vld [vmem:[#allocation2 + $0x48] sm:$0xff]  ;;  %v153_v63 = vld [vmem:[#allocation2 + $0x50] sm:$0xff]  ;;  %v154_v2 = vld [vmem:[#allocation2 + $0x58] sm:$0xff] }
  0x5e   :  { %v5904_v3 = vpack.c.bf16 %v154_v2, %v153_v63  ;;  %v156_v6 = vld [vmem:[#allocation2 + $0x68] sm:$0xff]  ;;  %v157_v17 = vld [vmem:[#allocation2 + $0x70] sm:$0xff]  ;;  %v158_v18 = vld [vmem:[#allocation2 + $0x78] sm:$0xff] }
  0x5f   :  { %3799 = vmatmul.mubr.msk.f32.gmra.mrb[4].mxu0 %vm303_vm4, %v302_v39  ;;  %v714_v39 = vrot.slane %v5642_v14, 4  ;;  %v5913_v19 = vpack.c.bf16 %v158_v18, %v157_v17  ;;  %v160_v24 = vld [vmem:[#allocation2 + $0x88] sm:$0x7f]  ;;  %v142_v27 = vld [vmem:[%s6949_s2] sm:$0x3]  ;;  %vm5924_vm7 = vmpackc.low %vm295_vm3, %vm5454_vm1  ;;  %s5456_s2 = smov 127  }
  0x60   :  { %476 = vmatprep.mubr.f32.mxu0 %v6963_v0  ;;  %vm1991_vm1 = vcmask 687104  }
  0x61   :  { %v715_v40 = vsel %vm310_vm0, %v713_v36, %v714_v39  ;;  %v717_v42 = vsel %vm310_vm0, %v714_v39, %v716_v41 }
  0x63   :  { %3802 = vmatmul.mubr.msk.f32.vlgmr.msra.gmra.mrb[0].mxu0 %vm303_vm4, %v5636_v13  ;;  %v719_v13 = vsel %vm310_vm0, %v716_v41, %v718_v43 }
  0x64   :  { %482 = vmatprep.mubr.f32.mxu0 %v6963_v0  ;;  %4771 = vmatpush1.bf16.msra.mxu0 %v5737_v44 }
  0x65   :  { %4774 = vmatprep.subr.msk.bf16.mxu0 %vm5599_vm2, %v5739_v45 }
  0x67   :  { %3803 = vmatmul.mubr.msk.f32.gmra.mrb[2].mxu0 %vm303_vm4, %v5642_v14  ;;  %v143_v14 = vld [vmem:[#allocation2] sm:$0xff] }
  0x68   :  { %488 = vmatprep.mubr.f32.mxu0 %v6963_v0  ;;  %4777 = vmatpush1.bf16.msk.msra.mxu0 %vm5599_vm2, %v5757_v50  ;;  %v5884_v48 = vpack.c.bf16 %v144_v46, %v143_v14 }
  0x69   :  { %4779 = vmatprep.subr.bf16.mxu0 %v5762_v51 }
  0x6b   :  { %3804 = vmatmul.mubr.msk.f32.gmra.mrb[4].mxu0 %vm303_vm4, %v5661_v20  ;;  %v6982_v20 = vmov 0.0|0.0  }
  0x6c   :  { %579 = vmatprep.mubr.f32.mxu0 %v6963_v0  ;;  %4798 = vmatprep.subr.bf16.mxu1 %v6982_v20 }
  0x6d   :  { %4800 = vmatpush1.bf16.msra.mxu1 %v5884_v48 }
  0x6e   :  { %4801 = vmatprep.subr.bf16.mxu1 %v6982_v20 }
  0x6f   :  { %3807 = vmatmul.mubr.msk.f32.vlgmr.msra.gmra.mrb[0].mxu0 %vm303_vm4, %v498_v58  ;;  %v151_v58 = vld [vmem:[#allocation2 + $0x40] sm:$0xff] }
  0x70   :  { %585 = vmatprep.mubr.f32.mxu0 %v6963_v0  ;;  %4781 = vmatpush1.bf16.msra.mxu0 %v5790_v60  ;;  %v5900_v62 = vpack.c.bf16 %v152_v59, %v151_v58 }
  0x71   :  { %4784 = vmatprep.subr.msk.bf16.mxu0 %vm5599_vm2, %v5792_v61  ;;  %4803 = vmatpush1.bf16.msra.mxu1 %v5888_v29 }
  0x72   :  { %4804 = vmatprep.subr.bf16.mxu1 %v6982_v20 }
  0x73   :  { %3808 = vmatmul.mubr.msk.f32.gmra.mrb[2].mxu0 %vm303_vm4, %v500_v4  ;;  %v155_v4 = vld [vmem:[#allocation2 + $0x60] sm:$0xff] }
  0x74   :  { %591 = vmatprep.mubr.f32.mxu0 %v6963_v0  ;;  %4787 = vmatpush1.bf16.msk.msra.mxu0 %vm5599_vm2, %v5811_v7 }
  0x75   :  { %4789 = vmatprep.subr.bf16.mxu0 %v5816_v8  ;;  %4806 = vmatpush1.bf16.msra.mxu1 %v5892_v54 }
  0x76   :  { %4807 = vmatprep.subr.bf16.mxu1 %v6982_v20 }
  0x77   :  { %3809 = vmatmul.mubr.msk.f32.gmra.mrb[4].mxu0 %vm303_vm4, %v502_v11  ;;  %v5908_v11 = vpack.c.bf16 %v156_v6, %v155_v4 }
  0x78   :  { %688 = vmatprep.mubr.f32.mxu0 %v6963_v0 }
  0x79   :  { %4809 = vmatpush1.bf16.msra.mxu1 %v5896_v57 }
  0x7a   :  { %4810 = vmatprep.subr.bf16.mxu1 %v6982_v20 }
  0x7b   :  { %3812 = vmatmul.mubr.msk.f32.vlgmr.msra.gmra.mrb[0].mxu0 %vm303_vm4, %v607_v23  ;;  %v159_v23 = vld [vmem:[#allocation2 + $0x80] sm:$0xff] }
  0x7c   :  { %694 = vmatprep.mubr.f32.mxu0 %v6963_v0  ;;  %4791 = vmatpush1.bf16.msra.mxu0 %v5843_v25  ;;  %v5920_v31 = vpack.c.bf16 %v160_v24, %v159_v23 }
  0x7d   :  { %4794 = vmatprep.subr.msk.bf16.mxu0 %vm5599_vm2, %v5845_v26  ;;  %4812 = vmatpush1.bf16.msra.mxu1 %v5900_v62 }
  0x7e   :  { %4813 = vmatprep.subr.bf16.mxu1 %v6982_v20 }
  0x7f   :  { %3813 = vmatmul.mubr.msk.f32.gmra.mrb[2].mxu0 %vm303_vm4, %v609_v32  ;;  %v828_v32 = vsub.s32 1, %v823_v15 }
  0x80   :  { %700 = vmatprep.mubr.f32.mxu0 %v6963_v0  ;;  %4797 = vmatpush1.bf16.msk.msra.mxu0 %vm5599_vm2, %v5858_v34 }
  0x81   :  { %4842 = vmatprep.subr.bf16.mxu0 %v6982_v20  ;;  %4815 = vmatpush1.bf16.msra.mxu1 %v5904_v3  ;;  %v5933_v36 = vrot.slane %v142_v27, %v828_v32 }
  0x82   :  { %4816 = vmatprep.subr.bf16.mxu1 %v6982_v20 }
  0x83   :  { %3814 = vmatmul.mubr.msk.f32.gmra.mrb[4].mxu0 %vm303_vm4, %v611_v35  ;;  %v5931_v35 = vrot.slane %v142_v27, %v824_v22 }
  0x84   :  { %796 = vmatprep.mubr.f32.mxu0 %v6963_v0 }
  0x85   :  { %4818 = vmatpush1.bf16.msra.mxu1 %v5908_v11 }
  0x86   :  { %4819 = vmatprep.subr.bf16.mxu1 %v6982_v20 }
  0x87   :  { %3817 = vmatmul.mubr.msk.f32.vlgmr.msra.gmra.mrb[0].mxu0 %vm303_vm4, %v715_v40 }
  0x88   :  { %802 = vmatprep.mubr.f32.mxu0 %v6963_v0 }
  0x89   :  { %4821 = vmatpush1.bf16.msra.mxu1 %v5913_v19 }
  0x8a   :  { %4822 = vmatprep.subr.bf16.mxu1 %v6982_v20 }
  0x8b   :  { %3818 = vmatmul.mubr.msk.f32.gmra.mrb[2].mxu0 %vm303_vm4, %v717_v42 }
  0x8c   :  { %808 = vmatprep.mubr.f32.mxu0 %v6963_v0 }
  0x8d   :  { %4825 = vmatpush1.bf16.msk.msra.mxu1 %vm5924_vm7, %v5920_v31 }
  0x8f   :  { %3819 = vmatmul.mubr.msk.f32.gmra.mrb[4].mxu0 %vm303_vm4, %v719_v13 }
  0x90   :  { %4220 = vmatprep.mubr.msk.f32.mxu0 %vm5457_vm11, %v6963_v0 }
 0x15a   :  { %v798_v39 = vpop.f32.mrb[0].mxu0 }
 0x15b   :  { %v832_v40 = vadd.f32 %v5931_v35, %v798_v39  ;;  %v800_v41 = vpop.f32.mrb[1].mxu0 }
 0x15c   :  { %v833_v43 = vadd.f32 %v5933_v36, %v800_v41 }
 0x15d   :  { %v838_v42 = vmax.f32 %v832_v40, 0.0 }
 0x15e   :  { %v804_v13 = vpop.f32.mrb[2].mxu0  ;;  %v839_v47 = vmax.f32 %v833_v43, 0.0 }
 0x15f   :  { %v834_v14 = vadd.f32 %v5931_v35, %v804_v13  ;;  %850 = vrot.lane.b32.xlu0 %v838_v42, %s5456_s2  ;;  %v806_v46 = vpop.f32.mrb[3].mxu0  ;;  %v163_v13 = vld [vmem:[%s6952_s5] sm:$0xff] }
 0x160   :  { %v835_v52 = vadd.f32 %v5933_v36, %v806_v46 }
 0x161   :  { %v840_v49 = vmax.f32 %v834_v14, 0.0  ;;  %v164_v14 = vld [vmem:[%s6952_s5 + $0x8] sm:$0xff] }
 0x162   :  { %v810_v53 = vpop.f32.mrb[4].mxu0  ;;  %v841_v58 = vmax.f32 %v835_v52, 0.0  ;;  %v5963_v46 = vpack.c.bf16 %v164_v14, %v163_v13  ;;  %v162_v13 = vld [vmem:[%s6951_s4 + $0x8] sm:$0xf] }
 0x163   :  { %v836_v55 = vadd.f32 %v5931_v35, %v810_v53  ;;  %852 = vrot.lane.b32.xlu0 %v839_v47, %s5456_s2  ;;  %854 = vrot.lane.b32.xlu1 %v840_v49, %s5456_s2  ;;  %v812_v56 = vpop.f32.mrb[5].mxu0  ;;  %v167_v53 = vld [vmem:[%s6952_s5 + $0x20] sm:$0xff] }
 0x164   :  { %v837_v63 = vadd.f32 %v5933_v36, %v812_v56  ;;  %4844 = vmatpush3.bf16.msra.mxu0 %v5963_v46 }
 0x165   :  { %v842_v59 = vmax.f32 %v836_v55, 0.0  ;;  %4845 = vmatprep.subr.bf16.mxu0 %v6982_v20  ;;  %v168_v55 = vld [vmem:[%s6952_s5 + $0x28] sm:$0xff] }
 0x166   :  { %v843_v2 = vmax.f32 %v837_v63, 0.0  ;;  %v5982_v56 = vpack.c.bf16 %v168_v55, %v167_v53  ;;  %v176_v55 = vld [vmem:[%s6952_s5 + $0x68] sm:$0xff] }
 0x167   :  { %856 = vrot.lane.b32.xlu1 %v841_v58, %s5456_s2  ;;  %858 = vrot.lane.b32.xlu0 %v842_v59, %s5456_s2 }
 0x16b   :  { %860 = vrot.lane.b32.xlu1 %v843_v2, %s5456_s2 }
 0x1d1   :  { %v851_v4 = vpop.permute.xlu0 %850 }
 0x1d5   :  { %v853_v6 = vpop.permute.xlu0 %852  ;;  %v855_v12 = vpop.permute.xlu1 %854 }
 0x1d6   :  { %v863_v15 = vsel %vm862_vm8, %v851_v4, %v853_v6  ;;  %v873_v17 = vmax.f32 %v839_v47, %v853_v6  ;;  %v165_v47 = vld [vmem:[%s6952_s5 + $0x10] sm:$0xff] }
 0x1d7   :  { %v872_v18 = vmax.f32 %v838_v42, %v863_v15  ;;  %v161_v42 = vld [vmem:[%s6951_s4] sm:$0xff] }
 0x1d8   :  { %3821 = vmatprep.mubr.msk.f32.mxu1 %vm878_vm9, %v873_v17 }
 0x1d9   :  { %956 = vmatmul.mubr.f32.vlgmr.msra.gmra.mrb[0].mxu1 %v872_v18  ;;  %v857_v22 = vpop.permute.xlu1 %856  ;;  %v859_v32 = vpop.permute.xlu0 %858 }
 0x1da   :  { %v864_v23 = vsel %vm862_vm8, %v855_v12, %v857_v22  ;;  %v875_v24 = vmax.f32 %v841_v58, %v857_v22  ;;  %v169_v58 = vld [vmem:[%s6952_s5 + $0x30] sm:$0xff] }
 0x1db   :  { %v874_v27 = vmax.f32 %v840_v49, %v864_v23  ;;  %v166_v49 = vld [vmem:[%s6952_s5 + $0x18] sm:$0xff] }
 0x1dc   :  { %3822 = vmatprep.mubr.msk.f32.mxu1 %vm878_vm9, %v875_v24  ;;  %v5972_v52 = vpack.c.bf16 %v166_v49, %v165_v47  ;;  %v174_v47 = vld [vmem:[%s6952_s5 + $0x58] sm:$0xff]  ;;  %v175_v49 = vld [vmem:[%s6952_s5 + $0x60] sm:$0xff] }
 0x1dd   :  { %961 = vmatmul.mubr.f32.gmra.mrb[2].mxu1 %v874_v27  ;;  %v861_v39 = vpop.permute.xlu1 %860  ;;  %v6021_v53 = vpack.c.bf16 %v175_v49, %v174_v47 }
 0x1de   :  { %v865_v40 = vsel %vm862_vm8, %v859_v32, %v861_v39  ;;  %v877_v41 = vmax.f32 %v843_v2, %v861_v39  ;;  %4847 = vmatpush3.bf16.msra.mxu0 %v5972_v52 }
 0x1df   :  { %v876_v43 = vmax.f32 %v842_v59, %v865_v40  ;;  %4848 = vmatprep.subr.bf16.mxu0 %v6982_v20  ;;  %v170_v59 = vld [vmem:[%s6952_s5 + $0x38] sm:$0xff] }
 0x1e0   :  { %3823 = vmatprep.mubr.msk.f32.mxu1 %vm878_vm9, %v877_v41  ;;  %v5992_v63 = vpack.c.bf16 %v170_v59, %v169_v58  ;;  %v177_v58 = vld [vmem:[%s6952_s5 + $0x70] sm:$0xff] }
 0x1e1   :  { %966 = vmatmul.mubr.f32.gmra.mrb[4].mxu1 %v876_v43  ;;  %v172_v43 = vld [vmem:[%s6952_s5 + $0x48] sm:$0xff]  ;;  %v6031_v59 = vpack.c.bf16 %v177_v58, %v176_v55 }
 0x1e2   :  { %4178 = vmatprep.mubr.msk.f32.mxu1 %vm985_vm10, %v161_v42  ;;  %4850 = vmatpush3.bf16.msra.mxu0 %v5982_v56  ;;  %v173_v42 = vld [vmem:[%s6952_s5 + $0x50] sm:$0xff] }
 0x1e3   :  { %4851 = vmatprep.subr.bf16.mxu0 %v6982_v20  ;;  %v6009_v14 = vpack.c.bf16 %v173_v42, %v172_v43 }
 0x1e6   :  { %4853 = vmatpush3.bf16.msra.mxu0 %v5992_v63 }
 0x1e7   :  { %4218 = vmatprep.subr.mxu0 %v6963_v0 }
 0x2ac   :  { %v957_v2 = vpop.f32.mrb[0].mxu1 }
 0x2ad   :  { %v959_v4 = vpop.f32.mrb[1].mxu1  ;;  %v974_v12 = vrot.slane %v957_v2, 1 }
 0x2ae   :  { %v179_v4 = vld [vmem:[%s6952_s5 + $0x80] sm:$0xff] }
 0x2b0   :  { %v962_v6 = vpop.f32.mrb[2].mxu1 }
 0x2b1   :  { %v975_v15 = vrot.slane %v962_v6, 1  ;;  %v964_v17 = vpop.f32.mrb[3].mxu1 }
 0x2b2   :  { %v190_v17 = vld [vmem:[%s6952_s5 + $0xd8] sm:$0xff] }
 0x2b3   :  { %v976_v18 = vsel %vm295_vm3, %v974_v12, %v975_v15  ;;  %v6049_v12 = vld [vmem:[%s6952_s5 + $0x40] sm:$0xff] }
 0x2b4   :  { %v967_v22 = vpop.f32.mrb[4].mxu1  ;;  %v982_v23 = vmax.f32 %v957_v2, %v976_v18  ;;  %v178_v2 = vld [vmem:[%s6952_s5 + $0x78] sm:$0xff]  ;;  %4219 = vmatpush3.msra.mxu0 %v6049_v12  ;;  %v191_v18 = vld [vmem:[%s6952_s5 + $0xe0] sm:$0xff] }
 0x2b5   :  { %v977_v24 = vrot.slane %v967_v22, 1  ;;  %v969_v27 = vpop.f32.mrb[5].mxu1  ;;  %4866 = vmatprep.subr.bf16.mxu0 %v6982_v20 }
 0x2b7   :  { %v978_v32 = vsel %vm295_vm3, %v975_v15, %v977_v24  ;;  %v984_v41 = vmax.f32 %v967_v22, %v977_v24  ;;  %v180_v15 = vld [vmem:[%s6952_s5 + $0x88] sm:$0xff]  ;;  %v181_v22 = vld [vmem:[%s6952_s5 + $0x90] sm:$0xff]  ;;  %v6073_v24 = vpack.c.bf16 %v191_v18, %v190_v17 }
 0x2b8   :  { %v983_v39 = vmax.f32 %v962_v6, %v978_v32  ;;  %v6041_v6 = vpack.c.bf16 %v179_v4, %v178_v2  ;;  %v184_v17 = vld [vmem:[%s6952_s5 + $0xa8] sm:$0xff] }
 0x2ba   :  { %v4826_v40 = vpack.c.bf16 %v983_v39, %v982_v23  ;;  %v182_v23 = vld [vmem:[%s6952_s5 + $0x98] sm:$0xff]  ;;  %v192_v39 = vld [vmem:[%s6952_s5 + $0xe8] sm:$0xff] }
 0x2bb   :  { %v6075_v32 = vpack.c.bf16 %v182_v23, %v181_v22  ;;  %v194_v22 = vld [vmem:[%s6952_s5 + $0xf8] sm:$0xff]  ;;  %v195_v23 = vld [vmem:[%s6952_s5 + $0x100] sm:$0xff] }
 0x2bc   :  { %4827 = vmatprep.subr.bf16.mxu1 %v4826_v40 }
 0x2bd   :  { %4829 = vmatpush3.bf16.msra.mxu1 %v4826_v40  ;;  %v193_v40 = vld [vmem:[%s6952_s5 + $0xf0] sm:$0xff] }
 0x2be   :  { %4176 = vmatprep.subr.msk.mxu1 %vm295_vm3, %v984_v41  ;;  %v6085_v4 = vpack.c.bf16 %v193_v40, %v192_v39 }
 0x2c1   :  { %4177 = vmatpush3.msk.msra.mxu1 %vm295_vm3, %v984_v41 }
 0x2c2   :  { %4179 = vmatmul.mubr.msk.f32.vlgmr.msra.gmra.mrb[6].mxu1 %vm985_vm10, %v162_v13  ;;  %4830 = vmatprep.subr.bf16.mxu1 %v6982_v20 }
 0x2c3   :  { %4832 = vmatpush3.bf16.msra.mxu1 %v6009_v14  ;;  %4199 = vmatprep.mubr.msk.f32.mxu1 %vm5457_vm11, %v6963_v0 }
 0x2c4   :  { %4833 = vmatprep.subr.bf16.mxu1 %v6982_v20 }
 0x2c7   :  { %4835 = vmatpush3.bf16.msra.mxu1 %v6021_v53 }
 0x2c8   :  { %4836 = vmatprep.subr.bf16.mxu1 %v6982_v20 }
 0x2cb   :  { %4838 = vmatpush3.bf16.msra.mxu1 %v6031_v59 }
 0x2cc   :  { %4839 = vmatprep.subr.bf16.mxu1 %v6982_v20 }
 0x2cf   :  { %4841 = vmatpush3.bf16.msra.mxu1 %v6041_v6 }
 0x2d0   :  { %4197 = vmatprep.subr.mxu1 %v6963_v0 }
 0x2d3   :  { %4198 = vmatpush3.msra.mxu1 %v180_v15  ;;  %v183_v15 = vld [vmem:[%s6952_s5 + $0xa0] sm:$0xff] }
 0x2d4   :  { %4854 = vmatprep.subr.bf16.mxu1 %v6982_v20 }
 0x395   :  { %v4180_v27 = vpop.f32.mrb[6].mxu1 }
 0x396   :  { %v1073_v41 = vrot.slane %v4180_v27, 1  ;;  %v1221_v43 = vrot.slane %v4180_v27, 2  ;;  %v1297_v42 = vrot.slane %v4180_v27, 3  ;;  %v1373_v13 = vrot.slane %v4180_v27, 4  ;;  %v1061_v47 = vpop.f32.mrb[7].mxu1 }
 0x397   :  { %v1072_v49 = vrot.slane %v1061_v47, 1  ;;  %v1220_v55 = vrot.slane %v1061_v47, 2  ;;  %v1296_v58 = vrot.slane %v1061_v47, 3  ;;  %v1372_v2 = vrot.slane %v1061_v47, 4  ;;  %4221 = vmatmul.mubr.msk.f32.vlgmr.msra.gmra.mrb[6].mxu0 %vm1075_vm12, %v1061_v47 }
 0x398   :  { %4868 = vmatpush3.bf16.msra.mxu0 %v6073_v24  ;;  %4262 = vmatprep.mubr.msk.f32.mxu0 %vm5457_vm11, %v6963_v0  ;;  %v6114_v47 = vpack.c.bf16 %v195_v23, %v194_v22  ;;  %v199_v22 = vld [vmem:[%s6952_s5 + $0x120] sm:$0xff]  ;;  %v200_v23 = vld [vmem:[%s6952_s5 + $0x128] sm:$0xff] }
 0x399   :  { %v1074_v18 = vsel %vm295_vm3, %v1072_v49, %v1073_v41  ;;  %4869 = vmatprep.subr.bf16.mxu0 %v6982_v20  ;;  %v1298_v27 = vsel %vm604_vm6, %v1296_v58, %v1297_v42  ;;  %v1222_v39 = vsel %vm495_vm5, %v1220_v55, %v1221_v43  ;;  %v1374_v40 = vsel %vm310_vm0, %v1372_v2, %v1373_v13  ;;  %v185_v43 = vld [vmem:[%s6952_s5 + $0xb0] sm:$0xff]  ;;  %v186_v42 = vld [vmem:[%s6952_s5 + $0xb8] sm:$0xff]  ;;  %v196_v13 = vld [vmem:[%s6952_s5 + $0x108] sm:$0xff] }
 0x39a   :  { %4200 = vmatmul.mubr.msk.f32.vlgmr.msra.gmra.mrb[8].mxu1 %vm1075_vm12, %v1074_v18  ;;  %v6108_v41 = vpack.c.bf16 %v184_v17, %v183_v15  ;;  %v197_v49 = vld [vmem:[%s6952_s5 + $0x110] sm:$0xff]  ;;  %v6130_v55 = vpack.c.bf16 %v186_v42, %v185_v43  ;;  %v187_v2 = vld [vmem:[%s6952_s5 + $0xc0] sm:$0xff]  ;;  %v188_v15 = vld [vmem:[%s6952_s5 + $0xc8] sm:$0xff]  ;;  %v6169_v42 = vpack.c.bf16 %v200_v23, %v199_v22 }
 0x39b   :  { %4856 = vmatpush3.bf16.msra.mxu1 %v6075_v32  ;;  %4241 = vmatprep.mubr.msk.f32.mxu1 %vm5457_vm11, %v6963_v0  ;;  %v6134_v58 = vpack.c.bf16 %v197_v49, %v196_v13  ;;  %v6144_v17 = vpack.c.bf16 %v188_v15, %v187_v2  ;;  %v6152_v18 = vld [vmem:[%s6952_s5 + $0x118] sm:$0xff]  ;;  %v6166_v43 = vld [vmem:[%s6952_s5 + $0xd0] sm:$0xff]  ;;  %v203_v2 = vld [vmem:[%s6952_s5 + $0x140] sm:$0xff] }
 0x39c   :  { %4871 = vmatpush3.bf16.msra.mxu0 %v6085_v4  ;;  %4857 = vmatprep.subr.bf16.mxu1 %v6982_v20  ;;  %7007 = vst [vmem:[#allocation17_spill] sm:$0xff] %v6152_v18  ;;  %7008 = vst [vmem:[#allocation18_spill] sm:$0xff] %v6166_v43  ;;  %v201_v13 = vld [vmem:[%s6952_s5 + $0x130] sm:$0xff]  ;;  %v202_v49 = vld [vmem:[%s6952_s5 + $0x138] sm:$0xff] }
 0x39d   :  { %4872 = vmatprep.subr.bf16.mxu0 %v6982_v20  ;;  %7005 = vst [vmem:[#allocation15_spill] sm:$0xff] %v6134_v58  ;;  %7006 = vst [vmem:[#allocation16_spill] sm:$0xff] %v6144_v17  ;;  %v204_v15 = vld [vmem:[%s6952_s5 + $0x148] sm:$0xff]  ;;  %v205_v22 = vld [vmem:[%s6952_s5 + $0x150] sm:$0xff] }
 0x39e   :  { %7009 = vst [vmem:[#allocation19_spill] sm:$0xff] %v6169_v42  ;;  %v206_v23 = vld [vmem:[%s6952_s5 + $0x158] sm:$0xff] }
 0x39f   :  { %4859 = vmatpush3.bf16.msra.mxu1 %v6108_v41 }
 0x3a0   :  { %4874 = vmatpush3.bf16.msra.mxu0 %v6114_v47  ;;  %4860 = vmatprep.subr.bf16.mxu1 %v6982_v20 }
 0x3a1   :  { %4875 = vmatprep.subr.bf16.mxu0 %v6982_v20 }
 0x3a3   :  { %4862 = vmatpush3.bf16.msra.mxu1 %v6130_v55 }
 0x3a4   :  { %4877 = vmatpush3.bf16.msra.mxu0 %v6134_v58  ;;  %4863 = vmatprep.subr.bf16.mxu1 %v6982_v20 }
 0x3a5   :  { %4260 = vmatprep.subr.mxu0 %v6963_v0 }
 0x3a7   :  { %4865 = vmatpush3.bf16.msra.mxu1 %v6144_v17 }
 0x3a8   :  { %4261 = vmatpush3.msra.mxu0 %v6152_v18  ;;  %4239 = vmatprep.subr.mxu1 %v6963_v0 }
 0x3a9   :  { %4263 = vmatmul.mubr.msk.f32.vlgmr.msra.gmra.mrb[8].mxu0 %vm1075_vm12, %v1298_v27  ;;  %4890 = vmatprep.subr.bf16.mxu0 %v6982_v20  ;;  %v6184_v27 = vpack.c.bf16 %v202_v49, %v201_v13  ;;  %v6206_v13 = vpack.c.bf16 %v206_v23, %v205_v22  ;;  %v6214_v49 = vld [vmem:[%s6952_s5 + $0x160] sm:$0xff]  ;;  %v211_v22 = vld [vmem:[%s6954_s7 + $0x10] sm:$0xff] }
 0x3aa   :  { %4318 = vmatprep.mubr.msk.f32.mxu0 %vm5457_vm11, %v6963_v0  ;;  %7013 = vst [vmem:[#allocation23_spill] sm:$0xff] %v6214_v49 }
 0x3ab   :  { %4240 = vmatpush3.msra.mxu1 %v6166_v43  ;;  %7010 = vst [vmem:[#allocation20_spill] sm:$0xff] %v6184_v27  ;;  %7012 = vst [vmem:[#allocation22_spill] sm:$0xff] %v6206_v13 }
 0x3ac   :  { %4242 = vmatmul.mubr.msk.f32.vlgmr.msra.gmra.mrb[10].mxu1 %vm1075_vm12, %v1222_v39  ;;  %4878 = vmatprep.subr.bf16.mxu1 %v6982_v20  ;;  %v6196_v39 = vpack.c.bf16 %v204_v15, %v203_v2  ;;  %v209_v2 = vld [vmem:[%s6954_s7] sm:$0xff]  ;;  %v210_v15 = vld [vmem:[%s6954_s7 + $0x8] sm:$0xff] }
 0x3ad   :  { %4880 = vmatpush3.bf16.msra.mxu1 %v6169_v42  ;;  %4283 = vmatprep.mubr.msk.f32.mxu1 %vm5457_vm11, %v6963_v0  ;;  %v6230_v23 = vpack.c.bf16 %v210_v15, %v209_v2  ;;  %v215_v15 = vld [vmem:[%s6954_s7 + $0x30] sm:$0xff] }
 0x3ae   :  { %4881 = vmatprep.subr.bf16.mxu1 %v6982_v20  ;;  %7011 = vst [vmem:[#allocation21_spill] sm:$0xff] %v6196_v39 }
 0x3af   :  { %7014 = vst [vmem:[#allocation24_spill] sm:$0xff] %v6230_v23  ;;  %4892 = vmatpush3.bf16.msra.mxu0 %v6230_v23 }
 0x3b0   :  { %4893 = vmatprep.subr.bf16.mxu0 %v6982_v20 }
 0x3b1   :  { %4883 = vmatpush3.bf16.msra.mxu1 %v6184_v27 }
 0x3b2   :  { %4884 = vmatprep.subr.bf16.mxu1 %v6982_v20 }
 0x3b5   :  { %4886 = vmatpush3.bf16.msra.mxu1 %v6196_v39 }
 0x3b6   :  { %4887 = vmatprep.subr.bf16.mxu1 %v6982_v20 }
 0x3b9   :  { %4889 = vmatpush3.bf16.msra.mxu1 %v6206_v13  ;;  %v214_v13 = vld [vmem:[%s6954_s7 + $0x28] sm:$0xff] }
 0x3ba   :  { %4281 = vmatprep.subr.mxu1 %v6963_v0 }
 0x3bd   :  { %4282 = vmatpush3.msra.mxu1 %v6214_v49  ;;  %v213_v49 = vld [vmem:[%s6954_s7 + $0x20] sm:$0xff] }
 0x3be   :  { %4284 = vmatmul.mubr.msk.f32.vlgmr.msra.gmra.mrb[12].mxu1 %vm1075_vm12, %v1374_v40  ;;  %4321 = vmatprep.subr.mxu1 %v6963_v0  ;;  %v212_v40 = vld [vmem:[%s6954_s7 + $0x18] sm:$0xff]  ;;  %v6246_v2 = vpack.c.bf16 %v214_v13, %v213_v49  ;;  %v217_v13 = vld [vmem:[%s6954_s7 + $0x40] sm:$0xff]  ;;  %v218_v49 = vld [vmem:[%s6954_s7 + $0x48] sm:$0xff] }
 0x3bf   :  { %4323 = vmatprep.mubr.msk.f32.mxu1 %vm5457_vm11, %v6963_v0  ;;  %v6236_v0 = vpack.c.bf16 %v212_v40, %v211_v22  ;;  %v216_v22 = vld [vmem:[%s6954_s7 + $0x38] sm:$0xff]  ;;  %v6266_v39 = vpack.c.bf16 %v218_v49, %v217_v13  ;;  %v221_v13 = vld [vmem:[%s6954_s7 + $0x60] sm:$0xff]  ;;  %v222_v49 = vld [vmem:[%s6954_s7 + $0x68] sm:$0xff] }
 0x3c0   :  { %7016 = vst [vmem:[#allocation26_spill] sm:$0xff] %v6246_v2  ;;  %v6256_v40 = vpack.c.bf16 %v216_v22, %v215_v15  ;;  %v219_v15 = vld [vmem:[%s6954_s7 + $0x50] sm:$0xff]  ;;  %v220_v22 = vld [vmem:[%s6954_s7 + $0x58] sm:$0xff] }
 0x3c1   :  { %7015 = vst [vmem:[#allocation25_spill] sm:$0xff] %v6236_v0  ;;  %4895 = vmatpush3.bf16.msra.mxu0 %v6236_v0  ;;  %7018 = vst [vmem:[#allocation28_spill] sm:$0xff] %v6266_v39 }
 0x3c2   :  { %4896 = vmatprep.subr.bf16.mxu0 %v6982_v20  ;;  %7017 = vst [vmem:[#allocation27_spill] sm:$0xff] %v6256_v40 }
 0x3c5   :  { %4898 = vmatpush3.bf16.msra.mxu0 %v6246_v2  ;;  %v6276_v2 = vpack.c.bf16 %v220_v22, %v219_v15  ;;  %v223_v15 = vld [vmem:[%s6954_s7 + $0x70] sm:$0xff]  ;;  %v224_v22 = vld [vmem:[%s6954_s7 + $0x78] sm:$0x7f] }
 0x3c6   :  { %4899 = vmatprep.subr.bf16.mxu0 %v6982_v20 }
 0x3c7   :  { %7019 = vst [vmem:[#allocation29_spill] sm:$0xff] %v6276_v2 }
 0x3c9   :  { %4901 = vmatpush3.bf16.msra.mxu0 %v6256_v40  ;;  %v6286_v40 = vpack.c.bf16 %v222_v49, %v221_v13 }
 0x3ca   :  { %4902 = vmatprep.subr.bf16.mxu0 %v6982_v20 }
 0x3cb   :  { %7020 = vst [vmem:[#allocation30_spill] sm:$0xff] %v6286_v40 }
 0x3cd   :  { %4904 = vmatpush3.bf16.msra.mxu0 %v6266_v39  ;;  %v6296_v39 = vpack.c.bf16 %v224_v22, %v223_v15  ;;  %v6306_v22 = vld [vmem:[%s6953_s6] ss:$0 sm:$0xff] }
 0x3ce   :  { %4905 = vmatprep.subr.bf16.mxu0 %v6982_v20 }
 0x3cf   :  { %7021 = vst [vmem:[#allocation31_spill] sm:$0xff] %v6296_v39 }
 0x3d1   :  { %4907 = vmatpush3.bf16.msra.mxu0 %v6276_v2 }
 0x3d2   :  { %4908 = vmatprep.subr.bf16.mxu0 %v6982_v20 }
 0x3d5   :  { %4910 = vmatpush3.bf16.msra.mxu0 %v6286_v40 }
 0x3d6   :  { %4911 = vmatprep.subr.bf16.mxu0 %v6982_v20 }
 0x3d9   :  { %4914 = vmatpush3.bf16.msk.msra.mxu0 %vm5924_vm7, %v6296_v39 }
 0x3da   :  { %4963 = vmatprep.subr.bf16.mxu0 %v6982_v20 }
 0x46a   :  { %v1216_v13 = vpop.f32.mrb[6].mxu0 }
 0x46b   :  { %v4222_v49 = vpop.f32.mrb[7].mxu0 }
 0x46d   :  { %v1144_v2 = vpop.f32.mrb[8].mxu1 }
 0x46e   :  { %v1217_v27 = vadd.f32 %v1216_v13, %v1144_v2  ;;  %v4201_v0 = vpop.f32.mrb[9].mxu1 }
 0x47c   :  { %v1367_v42 = vpop.f32.mrb[8].mxu0 }
 0x47d   :  { %v4264_v43 = vpop.f32.mrb[9].mxu0 }
 0x47e   :  { %v7022_v43 = vmov 0.0  }
 0x47f   :  { %v1291_v23 = vpop.f32.mrb[10].mxu1 }
 0x480   :  { %v1295_v18 = vadd.f32 %v1291_v23, %v1217_v27  ;;  %v4243_v40 = vpop.f32.mrb[11].mxu1  ;;  %v227_v27 = vld [vmem:[#allocation5 + $0x8] sm:$0xff] }
 0x482   :  { %v1371_v15 = vadd.f32 %v1367_v42, %v1295_v18  ;;  %v226_v42 = vld [vmem:[#allocation5] sm:$0xff] }
 0x491   :  { %v1443_v17 = vpop.f32.mrb[12].mxu1 }
 0x492   :  { %v1447_v39 = vadd.f32 %v1443_v17, %v1371_v15  ;;  %v4285_v58 = vpop.f32.mrb[13].mxu1  ;;  %v228_v17 = vld [vmem:[#allocation5 + $0x10] sm:$0xff]  ;;  %v7025_v15 = vmov 0.0|0.0  }
 0x493   :  { %v6316_v58 = vld [vmem:[%s6955_s8] sm:$0xf] }
 0x494   :  { %v1454_v20 = vadd.f32 %v6306_v22, %v1447_v39  ;;  %7023 = vst [vmem:[#allocation32_spill] sm:$0xff] %v6316_v58  ;;  %v229_v39 = vld [vmem:[#allocation5 + $0x18] sm:$0xff] }
 0x496   :  { %v1455_v49 = vmax.f32 %v1454_v20, 0.0  ;;  %v6318_v20 = vpack.c.bf16 %v227_v27, %v226_v42  ;;  %v232_v42 = vld [vmem:[#allocation5 + $0x30] sm:$0xff]  ;;  %v233_v27 = vld [vmem:[#allocation5 + $0x38] sm:$0xff] }
 0x498   :  { %1457 = vrot.lane.b32.xlu0 %v1455_v49, %s5456_s2  ;;  %7024 = vst [vmem:[#allocation33_spill] sm:$0xff] %v6318_v20 }
 0x50a   :  { %v1458_v0 = vpop.permute.xlu0 %1457 }
 0x50b   :  { %v1460_v2 = vmax.f32 %v1455_v49, %v1458_v0  ;;  %v6325_v49 = vpack.c.bf16 %v229_v39, %v228_v17  ;;  %v230_v0 = vld [vmem:[#allocation5 + $0x20] sm:$0xff] }
 0x50c   :  { %v261_v17 = vld [vmem:[%s6958_s11 + $0x10] sm:$0xff] }
 0x50d   :  { %4319 = vmatmul.mubr.msk.f32.vlgmr.msra.gmra.mrb[10].mxu0 %vm862_vm8, %v1460_v2  ;;  %7026 = vst [vmem:[#allocation34_spill] sm:$0xff] %v6325_v49  ;;  %v231_v2 = vld [vmem:[#allocation5 + $0x28] sm:$0xff] }
 0x50e   :  { %4432 = vmatprep.mubr.msk.f32.mxu0 %vm5457_vm11, %v7022_v43 }
 0x5e0   :  { %v1533_v18 = vpop.f32.mrb[10].mxu0 }
 0x5e1   :  { %v1538_v23 = vrot.slane %v1533_v18, 1  ;;  %v4320_v40 = vpop.f32.mrb[11].mxu0 }
 0x5e2   :  { %v259_v40 = vld [vmem:[%s6958_s11] sm:$0xff] }
 0x5e3   :  { %v1540_v13 = vmax.f32 %v1533_v18, %v1538_v23  ;;  %v6331_v18 = vpack.c.bf16 %v231_v2, %v230_v0  ;;  %v6335_v23 = vpack.c.bf16 %v233_v27, %v232_v42  ;;  %v262_v0 = vld [vmem:[%s6958_s11 + $0x18] sm:$0xff]  ;;  %v263_v42 = vld [vmem:[%s6958_s11 + $0x20] sm:$0xff]  ;;  %v264_v27 = vld [vmem:[%s6958_s11 + $0x28] sm:$0xff] }
 0x5e4   :  { %v6355_v2 = vpack.c.bf16 %v262_v0, %v261_v17  ;;  %v266_v17 = vld [vmem:[%s6958_s11 + $0x38] sm:$0xff]  ;;  %v234_v0 = vld [vmem:[#allocation5 + $0x40] sm:$0xff] }
 0x5e5   :  { %4322 = vmatpush3.msk.msra.mxu1 %vm295_vm3, %v1540_v13  ;;  %7027 = vst [vmem:[#allocation35_spill] sm:$0xff] %v6331_v18  ;;  %7028 = vst [vmem:[#allocation36_spill] sm:$0xff] %v6335_v23  ;;  %v260_v13 = vld [vmem:[%s6958_s11 + $0x8] sm:$0xff] }
 0x5e6   :  { %4324 = vmatmul.mubr.msk.f32.vlgmr.msra.gmra.mrb[14].mxu1 %vm1541_vm13, %v6316_v58  ;;  %4915 = vmatprep.subr.bf16.mxu1 %v7025_v15  ;;  %v6349_v39 = vpack.c.bf16 %v260_v13, %v259_v40  ;;  %7029 = vst [vmem:[#allocation37_spill] sm:$0xff] %v6355_v2  ;;  %v6365_v40 = vpack.c.bf16 %v264_v27, %v263_v42  ;;  %v265_v13 = vld [vmem:[%s6958_s11 + $0x30] sm:$0xff]  ;;  %v267_v42 = vld [vmem:[%s6958_s11 + $0x40] sm:$0xff]  ;;  %v268_v27 = vld [vmem:[%s6958_s11 + $0x48] sm:$0xff] }
 0x5e7   :  { %4917 = vmatpush3.bf16.msra.mxu1 %v6318_v20  ;;  %4342 = vmatprep.mubr.msk.f32.mxu1 %vm5457_vm11, %v7022_v43  ;;  %v236_v20 = vld [vmem:[#allocation5 + $0x50] sm:$0xff]  ;;  %v237_v58 = vld [vmem:[#allocation5 + $0x58] sm:$0xff] }
 0x5e8   :  { %4918 = vmatprep.subr.bf16.mxu1 %v7025_v15  ;;  %4965 = vmatpush3.bf16.msra.mxu0 %v6349_v39  ;;  %7030 = vst [vmem:[#allocation38_spill] sm:$0xff] %v6365_v40 }
 0x5e9   :  { %4966 = vmatprep.subr.bf16.mxu0 %v7025_v15 }
 0x5eb   :  { %4920 = vmatpush3.bf16.msra.mxu1 %v6325_v49 }
 0x5ec   :  { %4921 = vmatprep.subr.bf16.mxu1 %v7025_v15  ;;  %4968 = vmatpush3.bf16.msra.mxu0 %v6355_v2 }
 0x5ed   :  { %4969 = vmatprep.subr.bf16.mxu0 %v7025_v15 }
 0x5ef   :  { %4923 = vmatpush3.bf16.msra.mxu1 %v6331_v18  ;;  %v6375_v18 = vpack.c.bf16 %v266_v17, %v265_v13  ;;  %v6389_v13 = vpack.c.bf16 %v268_v27, %v267_v42  ;;  %v238_v42 = vld [vmem:[#allocation5 + $0x60] sm:$0xff]  ;;  %v239_v27 = vld [vmem:[#allocation5 + $0x68] sm:$0xff] }
 0x5f0   :  { %4924 = vmatprep.subr.bf16.mxu1 %v7025_v15  ;;  %4971 = vmatpush3.bf16.msra.mxu0 %v6365_v40  ;;  %v269_v40 = vld [vmem:[%s6958_s11 + $0x50] sm:$0xff] }
 0x5f1   :  { %7031 = vst [vmem:[#allocation39_spill] sm:$0xff] %v6375_v18  ;;  %4972 = vmatprep.subr.bf16.mxu0 %v7025_v15 }
 0x5f3   :  { %4926 = vmatpush3.bf16.msra.mxu1 %v6335_v23  ;;  %v235_v23 = vld [vmem:[#allocation5 + $0x48] sm:$0xff] }
 0x5f4   :  { %4927 = vmatprep.subr.bf16.mxu1 %v7025_v15  ;;  %v6384_v49 = vpack.c.bf16 %v235_v23, %v234_v0  ;;  %4974 = vmatpush3.bf16.msra.mxu0 %v6375_v18  ;;  %v270_v23 = vld [vmem:[%s6958_s11 + $0x58] sm:$0xff]  ;;  %v6401_v0 = vpack.c.bf16 %v237_v58, %v236_v20  ;;  %v6411_v18 = vpack.c.bf16 %v239_v27, %v238_v42  ;;  %v240_v58 = vld [vmem:[#allocation5 + $0x70] sm:$0xff]  ;;  %v241_v20 = vld [vmem:[#allocation5 + $0x78] sm:$0xff] }
 0x5f5   :  { %4975 = vmatprep.subr.bf16.mxu0 %v7025_v15 }
 0x5f6   :  { %7032 = vst [vmem:[#allocation40_spill] sm:$0xff] %v6384_v49  ;;  %7033 = vst [vmem:[#allocation41_spill] sm:$0xff] %v6401_v0 }
 0x5f7   :  { %7035 = vst [vmem:[#allocation43_spill] sm:$0xff] %v6411_v18 }
 0x5f8   :  { %4977 = vmatpush3.bf16.msra.mxu0 %v6389_v13 }
 0x5f9   :  { %4978 = vmatprep.subr.bf16.mxu0 %v7025_v15 }
 0x6b9   :  { %v6386_v2 = vpop.f32.mrb[14].mxu1 }
 0x6ba   :  { %v4325_v17 = vpop.f32.mrb[15].mxu1  ;;  %4343 = vmatmul.mubr.msk.f32.vlgmr.msra.gmra.mrb[16].mxu1 %vm1618_vm14, %v6386_v2  ;;  %v1693_v27 = vrot.slane %v6386_v2, 1 }
 0x6bb   :  { %4929 = vmatpush3.bf16.msra.mxu1 %v6384_v49  ;;  %4361 = vmatprep.mubr.msk.f32.mxu1 %vm5457_vm11, %v7022_v43  ;;  %v6407_v17 = vpack.c.bf16 %v270_v23, %v269_v40  ;;  %v6417_v49 = vpack.c.bf16 %v241_v20, %v240_v58  ;;  %v242_v40 = vld [vmem:[#allocation5 + $0x80] sm:$0xff]  ;;  %v243_v23 = vld [vmem:[#allocation5 + $0x88] sm:$0xff] }
 0x6bc   :  { %4930 = vmatprep.subr.bf16.mxu1 %v7025_v15  ;;  %v6421_v42 = vpack.c.bf16 %v243_v23, %v242_v40  ;;  %v246_v20 = vld [vmem:[#allocation5 + $0xa0] sm:$0xff]  ;;  %v247_v40 = vld [vmem:[#allocation5 + $0xa8] sm:$0xff] }
 0x6bd   :  { %7034 = vst [vmem:[#allocation42_spill] sm:$0xff] %v6407_v17  ;;  %4980 = vmatpush3.bf16.msra.mxu0 %v6407_v17  ;;  %7036 = vst [vmem:[#allocation44_spill] sm:$0xff] %v6417_v49  ;;  %v245_v17 = vld [vmem:[#allocation5 + $0x98] sm:$0xff]  ;;  %v6433_v23 = vpack.c.bf16 %v247_v40, %v246_v20  ;;  %v252_v20 = vld [vmem:[#allocation5 + $0xd0] sm:$0xff] }
 0x6be   :  { %4981 = vmatprep.subr.bf16.mxu0 %v7025_v15  ;;  %7037 = vst [vmem:[#allocation45_spill] sm:$0xff] %v6421_v42  ;;  %v253_v40 = vld [vmem:[#allocation5 + $0xd8] sm:$0xff] }
 0x6bf   :  { %4932 = vmatpush3.bf16.msra.mxu1 %v6401_v0  ;;  %v244_v0 = vld [vmem:[#allocation5 + $0x90] sm:$0xff]  ;;  %7039 = vst [vmem:[#allocation47_spill] sm:$0xff] %v6433_v23 }
 0x6c0   :  { %4933 = vmatprep.subr.bf16.mxu1 %v7025_v15  ;;  %v6427_v58 = vpack.c.bf16 %v245_v17, %v244_v0  ;;  %v250_v0 = vld [vmem:[#allocation5 + $0xc0] sm:$0xff]  ;;  %v251_v17 = vld [vmem:[#allocation5 + $0xc8] sm:$0xff] }
 0x6c2   :  { %7038 = vst [vmem:[#allocation46_spill] sm:$0xff] %v6427_v58 }
 0x6c3   :  { %4935 = vmatpush3.bf16.msra.mxu1 %v6411_v18  ;;  %v249_v18 = vld [vmem:[#allocation5 + $0xb8] sm:$0xff] }
 0x6c4   :  { %4936 = vmatprep.subr.bf16.mxu1 %v7025_v15 }
 0x6c7   :  { %4938 = vmatpush3.bf16.msra.mxu1 %v6417_v49  ;;  %v248_v49 = vld [vmem:[#allocation5 + $0xb0] sm:$0xff] }
 0x6c8   :  { %4939 = vmatprep.subr.bf16.mxu1 %v7025_v15 }
 0x6ca   :  { %4362 = vmatmul.mubr.msk.f32.vlgmr.msra.gmra.mrb[16].mxu1 %vm1618_vm14, %v1693_v27  ;;  %v6437_v27 = vpack.c.bf16 %v249_v18, %v248_v49  ;;  %v6447_v49 = vpack.c.bf16 %v253_v40, %v252_v20  ;;  %v254_v18 = vld [vmem:[#allocation5 + $0xe0] sm:$0xff]  ;;  %v1841_v20 = vrot.slane %v6386_v2, 3  ;;  %v6466_v40 = vld [vmem:[%s6947_s0 + $0x20] sm:$0xff] }
 0x6cb   :  { %4941 = vmatpush3.bf16.msra.mxu1 %v6421_v42  ;;  %4380 = vmatprep.mubr.msk.f32.mxu1 %vm5457_vm11, %v7022_v43  ;;  %v6441_v42 = vpack.c.bf16 %v251_v17, %v250_v0  ;;  %v255_v0 = vld [vmem:[#allocation5 + $0xe8] sm:$0xff] }
 0x6cc   :  { %4942 = vmatprep.subr.bf16.mxu1 %v7025_v15  ;;  %7040 = vst [vmem:[#allocation48_spill] sm:$0xff] %v6437_v27  ;;  %v6453_v17 = vpack.c.bf16 %v255_v0, %v254_v18  ;;  %v6471_v18 = vld [vmem:[%s6947_s0 + $0x28] sm:$0xff]  ;;  %v6495_v0 = vld [vmem:[%s6947_s0 + $0x38] sm:$0xf] }
 0x6cf   :  { %4944 = vmatpush3.bf16.msra.mxu1 %v6427_v58  ;;  %v1767_v58 = vrot.slane %v6386_v2, 2  ;;  %v2079_v2 = vrot.slane %v6466_v40, 1 }
 0x6d0   :  { %4945 = vmatprep.subr.bf16.mxu1 %v7025_v15 }
 0x6d3   :  { %4947 = vmatpush3.bf16.msra.mxu1 %v6433_v23  ;;  %v257_v23 = vld [vmem:[#allocation5 + $0xf8] sm:$0xff] }
 0x6d4   :  { %4948 = vmatprep.subr.bf16.mxu1 %v7025_v15 }
 0x6d7   :  { %4950 = vmatpush3.bf16.msra.mxu1 %v6437_v27  ;;  %v256_v27 = vld [vmem:[#allocation5 + $0xf0] sm:$0xff] }
 0x6d8   :  { %4951 = vmatprep.subr.bf16.mxu1 %v7025_v15 }
 0x6da   :  { %4381 = vmatmul.mubr.msk.f32.vlgmr.msra.gmra.mrb[16].mxu1 %vm1618_vm14, %v1767_v58  ;;  %v6457_v58 = vpack.c.bf16 %v257_v23, %v256_v27  ;;  %v6484_v23 = vld [vmem:[%s6947_s0 + $0x30] sm:$0xff] }
 0x6db   :  { %4953 = vmatpush3.bf16.msra.mxu1 %v6441_v42  ;;  %4399 = vmatprep.mubr.msk.f32.mxu1 %vm5457_vm11, %v7022_v43  ;;  %v2082_v27 = vrot.slane %v6484_v23, 1 }
 0x6dc   :  { %4954 = vmatprep.subr.bf16.mxu1 %v7025_v15 }
 0x6df   :  { %4956 = vmatpush3.bf16.msra.mxu1 %v6447_v49 }
 0x6e0   :  { %4957 = vmatprep.subr.bf16.mxu1 %v7025_v15 }
 0x6e3   :  { %4959 = vmatpush3.bf16.msra.mxu1 %v6453_v17 }
 0x6e4   :  { %4960 = vmatprep.subr.bf16.mxu1 %v7025_v15 }
 0x6e7   :  { %4962 = vmatpush3.bf16.msra.mxu1 %v6457_v58 }
 0x6e8   :  { %5000 = vmatprep.subr.bf16.mxu1 %v5612_v5  ;;  %v2080_v5 = vrot.slane %v6471_v18, 1 }
 0x6ea   :  { %4400 = vmatmul.mubr.msk.f32.vlgmr.msra.gmra.mrb[16].mxu1 %vm1618_vm14, %v1841_v20  ;;  %v2369_v20 = vrot.slane %v6484_v23, 3 }
 0x6eb   :  { %5002 = vmatpush1.bf16.msra.mxu1 %v5623_v9  ;;  %2156 = vmatprep.mubr.f32.mxu1 %v7022_v43  ;;  %v2081_v9 = vsel %vm295_vm3, %v2079_v2, %v2080_v5  ;;  %v2371_v2 = vrot.slane %v6495_v0, 3 }
 0x6ec   :  { %5005 = vmatprep.subr.msk.bf16.mxu1 %vm5599_vm2, %v5625_v10  ;;  %v2083_v10 = vsel %vm295_vm3, %v2080_v5, %v2082_v27  ;;  %v2468_v5 = vrot.slane %v6466_v40, 4 }
 0x6ef   :  { %5008 = vmatpush1.bf16.msk.msra.mxu1 %vm5599_vm2, %v5648_v16  ;;  %v2084_v16 = vrot.slane %v6495_v0, 1 }
 0x6f0   :  { %5010 = vmatprep.subr.bf16.mxu1 %v5663_v21 }
 0x6f1   :  { %v2085_v21 = vsel %vm295_vm3, %v2082_v27, %v2084_v16 }
 0x6f2   :  { %3850 = vmatmul.mubr.msk.f32.vlgmr.msra.gmra.mrb[18].mxu1 %vm303_vm4, %v2081_v9  ;;  %v2471_v9 = vrot.slane %v6484_v23, 4 }
 0x6f3   :  { %2162 = vmatprep.mubr.f32.mxu1 %v7022_v43  ;;  %5012 = vmatpush1.bf16.msra.mxu1 %v5682_v28  ;;  %v2264_v28 = vrot.slane %v6466_v40, 2 }
 0x6f4   :  { %5015 = vmatprep.subr.msk.bf16.mxu1 %vm5599_vm2, %v5690_v30  ;;  %v2265_v30 = vrot.slane %v6471_v18, 2 }
 0x6f6   :  { %3851 = vmatmul.mubr.msk.f32.gmra.mrb[20].mxu1 %vm303_vm4, %v2083_v10 }
 0x6f7   :  { %2168 = vmatprep.mubr.f32.mxu1 %v7022_v43  ;;  %5018 = vmatpush1.bf16.msk.msra.mxu1 %vm5599_vm2, %v5709_v37  ;;  %v2266_v37 = vsel %vm495_vm5, %v2264_v28, %v2265_v30 }
 0x6f8   :  { %5020 = vmatprep.subr.bf16.mxu1 %v5714_v38  ;;  %v2267_v38 = vrot.slane %v6484_v23, 2 }
 0x6fa   :  { %3852 = vmatmul.mubr.msk.f32.gmra.mrb[22].mxu1 %vm303_vm4, %v2085_v21 }
 0x6fb   :  { %2245 = vmatprep.mubr.f32.mxu1 %v7022_v43 }
 0x6fe   :  { %3855 = vmatmul.mubr.msk.f32.vlgmr.msra.gmra.mrb[18].mxu1 %vm303_vm4, %v6466_v40 }
 0x6ff   :  { %2251 = vmatprep.mubr.f32.mxu1 %v7022_v43  ;;  %5022 = vmatpush1.bf16.msra.mxu1 %v5737_v44  ;;  %v2268_v44 = vsel %vm495_vm5, %v2265_v30, %v2267_v38  ;;  %v275_v30 = vld [vmem:[%s6960_s13] sm:$0xff] }
 0x700   :  { %5025 = vmatprep.subr.msk.bf16.mxu1 %vm5599_vm2, %v5739_v45  ;;  %v2269_v45 = vrot.slane %v6495_v0, 2 }
 0x702   :  { %3856 = vmatmul.mubr.msk.f32.gmra.mrb[20].mxu1 %vm303_vm4, %v6471_v18 }
 0x703   :  { %2257 = vmatprep.mubr.f32.mxu1 %v7022_v43  ;;  %5028 = vmatpush1.bf16.msk.msra.mxu1 %vm5599_vm2, %v5757_v50  ;;  %v2270_v50 = vsel %vm495_vm5, %v2267_v38, %v2269_v45  ;;  %v277_v38 = vld [vmem:[%s6960_s13 + $0x10] sm:$0xff] }
 0x704   :  { %5030 = vmatprep.subr.bf16.mxu1 %v5762_v51  ;;  %v2366_v51 = vrot.slane %v6466_v40, 3 }
 0x706   :  { %3857 = vmatmul.mubr.msk.f32.gmra.mrb[22].mxu1 %vm303_vm4, %v6484_v23 }
 0x707   :  { %2341 = vmatprep.mubr.f32.mxu1 %v7022_v43 }
 0x70a   :  { %3860 = vmatmul.mubr.msk.f32.vlgmr.msra.gmra.mrb[18].mxu1 %vm303_vm4, %v2266_v37  ;;  %v276_v37 = vld [vmem:[%s6960_s13 + $0x8] sm:$0xff] }
 0x70b   :  { %2347 = vmatprep.mubr.f32.mxu1 %v7022_v43  ;;  %5032 = vmatpush1.bf16.msra.mxu1 %v5790_v60  ;;  %v2367_v60 = vrot.slane %v6471_v18, 3  ;;  %v6634_v45 = vpack.c.bf16 %v276_v37, %v275_v30 }
 0x70c   :  { %5035 = vmatprep.subr.msk.bf16.mxu1 %vm5599_vm2, %v5792_v61 }
 0x70d   :  { %v2368_v61 = vsel %vm604_vm6, %v2366_v51, %v2367_v60 }
 0x70e   :  { %3861 = vmatmul.mubr.msk.f32.gmra.mrb[20].mxu1 %vm303_vm4, %v2268_v44 }
 0x70f   :  { %2353 = vmatprep.mubr.f32.mxu1 %v7022_v43  ;;  %5038 = vmatpush1.bf16.msk.msra.mxu1 %vm5599_vm2, %v5811_v7  ;;  %v2370_v7 = vsel %vm604_vm6, %v2367_v60, %v2369_v20 }
 0x710   :  { %5040 = vmatprep.subr.bf16.mxu1 %v5816_v8  ;;  %v2372_v8 = vsel %vm604_vm6, %v2369_v20, %v2371_v2 }
 0x712   :  { %3862 = vmatmul.mubr.msk.f32.gmra.mrb[22].mxu1 %vm303_vm4, %v2270_v50  ;;  %v278_v50 = vld [vmem:[%s6960_s13 + $0x18] sm:$0xff] }
 0x713   :  { %2443 = vmatprep.mubr.f32.mxu1 %v7022_v43 }
 0x716   :  { %3865 = vmatmul.mubr.msk.f32.vlgmr.msra.gmra.mrb[18].mxu1 %vm303_vm4, %v2368_v61 }
 0x717   :  { %2449 = vmatprep.mubr.f32.mxu1 %v7022_v43  ;;  %5042 = vmatpush1.bf16.msra.mxu1 %v5843_v25  ;;  %v2469_v25 = vrot.slane %v6471_v18, 4 }
 0x718   :  { %5045 = vmatprep.subr.msk.bf16.mxu1 %vm5599_vm2, %v5845_v26 }
 0x719   :  { %v2470_v26 = vsel %vm310_vm0, %v2468_v5, %v2469_v25  ;;  %v2472_v1 = vsel %vm310_vm0, %v2469_v25, %v2471_v9  ;;  %v280_v5 = vld [vmem:[%s6960_s13 + $0x28] sm:$0xff] }
 0x71a   :  { %3866 = vmatmul.mubr.msk.f32.gmra.mrb[20].mxu1 %vm303_vm4, %v2370_v7  ;;  %v6646_v7 = vpack.c.bf16 %v278_v50, %v277_v38 }
 0x71b   :  { %2455 = vmatprep.mubr.f32.mxu1 %v7022_v43  ;;  %5048 = vmatpush1.bf16.msk.msra.mxu1 %vm5599_vm2, %v5858_v34  ;;  %v2473_v34 = vrot.slane %v6495_v0, 4  ;;  %vm2068_vm2 = vcmask 73728  }
 0x71c   :  { %5093 = vmatprep.subr.bf16.mxu1 %v7025_v15 }
 0x71d   :  { %v2474_v40 = vsel %vm310_vm0, %v2471_v9, %v2473_v34 }
 0x71e   :  { %3867 = vmatmul.mubr.msk.f32.gmra.mrb[22].mxu1 %vm303_vm4, %v2372_v8  ;;  %v279_v8 = vld [vmem:[%s6960_s13 + $0x20] sm:$0xff] }
 0x71f   :  { %2545 = vmatprep.mubr.f32.mxu1 %v7022_v43 }
 0x722   :  { %3870 = vmatmul.mubr.msk.f32.vlgmr.msra.gmra.mrb[18].mxu1 %vm303_vm4, %v2470_v26 }
 0x723   :  { %2551 = vmatprep.mubr.f32.mxu1 %v7022_v43  ;;  %5095 = vmatpush3.bf16.msra.mxu1 %v5963_v46  ;;  %v271_v46 = vld [vmem:[%s6958_s11 + $0x60] sm:$0xff] }
 0x724   :  { %5096 = vmatprep.subr.bf16.mxu1 %v7025_v15 }
 0x726   :  { %3871 = vmatmul.mubr.msk.f32.gmra.mrb[20].mxu1 %vm303_vm4, %v2472_v1 }
 0x727   :  { %2557 = vmatprep.mubr.f32.mxu1 %v7022_v43  ;;  %5098 = vmatpush3.bf16.msra.mxu1 %v5972_v52  ;;  %v272_v52 = vld [vmem:[%s6958_s11 + $0x68] sm:$0xff] }
 0x728   :  { %5099 = vmatprep.subr.bf16.mxu1 %v7025_v15 }
 0x72a   :  { %3872 = vmatmul.mubr.msk.f32.gmra.mrb[22].mxu1 %vm303_vm4, %v2474_v40  ;;  %v6668_v40 = vpack.c.bf16 %v280_v5, %v279_v8 }
 0x72b   :  { %5101 = vmatpush3.bf16.msra.mxu1 %v5982_v56  ;;  %4508 = vmatprep.mubr.msk.f32.mxu1 %vm5457_vm11, %v7022_v43  ;;  %v6603_v56 = vpack.c.bf16 %v272_v52, %v271_v46  ;;  %v282_v52 = vld [vmem:[%s6960_s13 + $0x38] sm:$0xff] }
 0x72c   :  { %5102 = vmatprep.subr.bf16.mxu1 %v7025_v15 }
 0x72d   :  { %4983 = vmatpush3.bf16.msra.mxu0 %v6603_v56 }
 0x72e   :  { %4430 = vmatprep.subr.mxu0 %v7022_v43 }
 0x72f   :  { %5104 = vmatpush3.bf16.msra.mxu1 %v5992_v63  ;;  %v6610_v63 = vld [vmem:[%s6958_s11 + $0x70] sm:$0xff] }
 0x730   :  { %4506 = vmatprep.subr.mxu1 %v7022_v43 }
 0x731   :  { %4431 = vmatpush3.msra.mxu0 %v6610_v63 }
 0x732   :  { %4984 = vmatprep.subr.bf16.mxu0 %v7025_v15 }
 0x733   :  { %4507 = vmatpush3.msra.mxu1 %v6049_v12  ;;  %v6614_v12 = vld [vmem:[#allocation7] sm:$0x1] }
 0x734   :  { %5117 = vmatprep.subr.bf16.mxu1 %v7025_v15 }
 0x7bd   :  { %v1910_v18 = vpop.f32.mrb[16].mxu1 }
 0x7be   :  { %v5250_v23 = vadd.f32 %v1910_v18, %v6614_v12  ;;  %v4401_v27 = vpop.f32.mrb[17].mxu1 }
 0x7bf   :  { %v283_v27 = vld [vmem:[%s6960_s13 + $0x40] sm:$0xff] }
 0x7c0   :  { %v1915_v0 = vmax.f32 %v5250_v23, 0.0 }
 0x7c2   :  { %4433 = vmatmul.mubr.msk.f32.vlgmr.msra.gmra.mrb[12].mxu0 %vm1916_vm15, %v1915_v0  ;;  %v284_v0 = vld [vmem:[%s6960_s13 + $0x48] sm:$0xff] }
 0x7c3   :  { %4457 = vmatprep.mubr.msk.f32.mxu0 %vm5457_vm11, %v7022_v43  ;;  %4986 = vmatpush3.bf16.msra.mxu0 %v6634_v45 }
 0x7c4   :  { %4987 = vmatprep.subr.bf16.mxu0 %v7025_v15 }
 0x7c7   :  { %4989 = vmatpush3.bf16.msra.mxu0 %v6646_v7 }
 0x7c8   :  { %4990 = vmatprep.subr.bf16.mxu0 %v7025_v15 }
 0x7cb   :  { %4992 = vmatpush3.bf16.msra.mxu0 %v6668_v40 }
 0x7cc   :  { %4993 = vmatprep.subr.bf16.mxu0 %v7025_v15 }
 0x7f5   :  { %v2547_v10 = vpop.f32.mrb[18].mxu1 }
 0x7f6   :  { %v6621_v16 = vadd.f32 %v2547_v10, %v5931_v35  ;;  %v2549_v21 = vpop.f32.mrb[19].mxu1  ;;  %v6698_v10 = vpack.c.bf16 %v284_v0, %v283_v27 }
 0x7f7   :  { %v2571_v28 = vadd.f32 %v2549_v21, %v5933_v36  ;;  %v6706_v21 = vld [vmem:[%s6960_s13 + $0x50] sm:$0xf] }
 0x7f8   :  { %v2576_v44 = vmax.f32 %v6621_v16, 0.0  ;;  %v5326_v16 = vld [vmem:[%s6951_s4] sm:$0xff] }
 0x7f9   :  { %v2577_v51 = vmax.f32 %v2571_v28, 0.0  ;;  %v2553_v60 = vpop.f32.mrb[20].mxu1  ;;  %v6711_v28 = vld [vmem:[#allocation8] sm:$0x1] }
 0x7fa   :  { %v6640_v61 = vadd.f32 %v2553_v60, %v5931_v35  ;;  %v2555_v20 = vpop.f32.mrb[21].mxu1  ;;  %2588 = vrot.lane.b32.xlu1 %v2576_v44, %s5456_s2 }
 0x7fb   :  { %v6649_v2 = vadd.f32 %v2555_v20, %v5933_v36  ;;  %2590 = vrot.lane.b32.xlu0 %v2577_v51, %s5456_s2 }
 0x7fc   :  { %v2578_v25 = vmax.f32 %v6640_v61, 0.0 }
 0x7fd   :  { %v2579_v26 = vmax.f32 %v6649_v2, 0.0  ;;  %v2559_v9 = vpop.f32.mrb[22].mxu1 }
 0x7fe   :  { %v6662_v1 = vadd.f32 %v2559_v9, %v5931_v35  ;;  %v2561_v34 = vpop.f32.mrb[23].mxu1  ;;  %2592 = vrot.lane.b32.xlu1 %v2578_v25, %s5456_s2  ;;  %v281_v35 = vld [vmem:[%s6960_s13 + $0x30] sm:$0xff] }
 0x7ff   :  { %v6671_v46 = vadd.f32 %v2561_v34, %v5933_v36  ;;  %2594 = vrot.lane.b32.xlu0 %v2579_v26, %s5456_s2  ;;  %v6687_v36 = vpack.c.bf16 %v282_v52, %v281_v35 }
 0x800   :  { %v2580_v18 = vmax.f32 %v6662_v1, 0.0 }
 0x801   :  { %v2581_v23 = vmax.f32 %v6671_v46, 0.0  ;;  %4995 = vmatpush3.bf16.msra.mxu0 %v6687_v36 }
 0x802   :  { %2596 = vrot.lane.b32.xlu1 %v2580_v18, %s5456_s2  ;;  %4996 = vmatprep.subr.bf16.mxu0 %v7025_v15 }
 0x803   :  { %2598 = vrot.lane.b32.xlu0 %v2581_v23, %s5456_s2 }
 0x805   :  { %4998 = vmatpush3.bf16.msra.mxu0 %v6698_v10 }
 0x806   :  { %4455 = vmatprep.subr.mxu0 %v7022_v43 }
 0x809   :  { %4456 = vmatpush3.msk.msra.mxu0 %vm310_vm0, %v6706_v21 }
 0x80a   :  { %5049 = vmatprep.subr.bf16.mxu0 %v7025_v15 }
 0x86d   :  { %v2591_v37 = vpop.permute.xlu0 %2590 }
 0x86e   :  { %v2610_v20 = vmax.f32 %v2577_v51, %v2591_v37 }
 0x895   :  { %v1986_v30 = vpop.f32.mrb[12].mxu0 }
 0x896   :  { %v1987_v38 = vadd.f32 %v1986_v30, %v6711_v28  ;;  %v4434_v50 = vpop.f32.mrb[13].mxu0 }
 0x898   :  { %v1990_v60 = vmax.f32 %v1987_v38, 0.0 }
 0x89a   :  { %4458 = vmatmul.mubr.msk.f32.vlgmr.msra.gmra.mrb[14].mxu0 %vm1991_vm1, %v1990_v60 }
 0x89b   :  { %5051 = vmatpush1.bf16.msra.mxu0 %v5884_v48  ;;  %3874 = vmatprep.mubr.msk.f32.mxu0 %vm878_vm9, %v2610_v20  ;;  %v2589_v48 = vpop.permute.xlu1 %2588  ;;  %v5327_v20 = vld [vmem:[%s6951_s4 + $0x8] sm:$0xf] }
 0x89c   :  { %5052 = vmatprep.subr.bf16.mxu0 %v7025_v15 }
 0x89f   :  { %5054 = vmatpush1.bf16.msra.mxu0 %v5888_v29  ;;  %v2593_v29 = vpop.permute.xlu1 %2592 }
 0x8a0   :  { %5055 = vmatprep.subr.bf16.mxu0 %v7025_v15 }
 0x8a3   :  { %5057 = vmatpush1.bf16.msra.mxu0 %v5892_v54  ;;  %v2595_v54 = vpop.permute.xlu0 %2594  ;;  %v2597_v51 = vpop.permute.xlu1 %2596 }
 0x8a4   :  { %5058 = vmatprep.subr.bf16.mxu0 %v7025_v15 }
 0x8a7   :  { %5060 = vmatpush1.bf16.msra.mxu0 %v5896_v57  ;;  %v2600_v57 = vsel %vm862_vm8, %v2589_v48, %v2591_v37 }
 0x8a8   :  { %5061 = vmatprep.subr.bf16.mxu0 %v7025_v15 }
 0x8ab   :  { %5063 = vmatpush1.bf16.msra.mxu0 %v5900_v62  ;;  %v2609_v62 = vmax.f32 %v2576_v44, %v2600_v57  ;;  %v6753_v44 = vld [vmem:[%s6961_s14] sm:$0x1] }
 0x8ac   :  { %5064 = vmatprep.subr.bf16.mxu0 %v7025_v15 }
 0x8af   :  { %5066 = vmatpush1.bf16.msra.mxu0 %v5904_v3  ;;  %v2601_v3 = vsel %vm862_vm8, %v2593_v29, %v2595_v54 }
 0x8b0   :  { %5067 = vmatprep.subr.bf16.mxu0 %v7025_v15  ;;  %v2611_v8 = vmax.f32 %v2578_v25, %v2601_v3 }
 0x8b3   :  { %5069 = vmatpush1.bf16.msra.mxu0 %v5908_v11  ;;  %v2612_v11 = vmax.f32 %v2579_v26, %v2595_v54 }
 0x8b4   :  { %5070 = vmatprep.subr.bf16.mxu0 %v7025_v15 }
 0x8b7   :  { %5072 = vmatpush1.bf16.msra.mxu0 %v5913_v19  ;;  %v2599_v19 = vpop.permute.xlu0 %2598 }
 0x8b8   :  { %5073 = vmatprep.subr.bf16.mxu0 %v7025_v15  ;;  %v2602_v5 = vsel %vm862_vm8, %v2597_v51, %v2599_v19  ;;  %v2614_v9 = vmax.f32 %v2581_v23, %v2599_v19 }
 0x8bb   :  { %5076 = vmatpush1.bf16.msk.msra.mxu0 %vm5924_vm7, %v5920_v31  ;;  %v2613_v31 = vmax.f32 %v2580_v18, %v2602_v5 }
 0x8be   :  { %2689 = vmatmul.mubr.f32.vlgmr.msra.gmra.mrb[16].mxu0 %v2609_v62 }
 0x8bf   :  { %3875 = vmatprep.mubr.msk.f32.mxu0 %vm878_vm9, %v2612_v11 }
 0x8c2   :  { %2694 = vmatmul.mubr.f32.gmra.mrb[18].mxu0 %v2611_v8 }
 0x8c3   :  { %3876 = vmatprep.mubr.msk.f32.mxu0 %vm878_vm9, %v2614_v9  ;;  %v7047_v9 = vld [vmem:[#allocation25_spill] sm:$0xff] }
 0x8c6   :  { %2699 = vmatmul.mubr.f32.gmra.mrb[20].mxu0 %v2613_v31  ;;  %v7048_v31 = vld [vmem:[#allocation20_spill] sm:$0xff] }
 0x8c7   :  { %4466 = vmatprep.mubr.msk.f32.mxu0 %vm985_vm10, %v5326_v16  ;;  %v7049_v16 = vld [vmem:[#allocation26_spill] sm:$0xff] }
 0x96d   :  { %v2064_v61 = vpop.f32.mrb[14].mxu0 }
 0x96e   :  { %v2065_v2 = vadd.f32 %v2064_v61, %v6753_v44  ;;  %v4459_v25 = vpop.f32.mrb[15].mxu0  ;;  %v7050_v61 = vld [vmem:[#allocation21_spill] sm:$0xff] }
 0x96f   :  { %v7052_v25 = vld [vmem:[#allocation22_spill] sm:$0xff] }
 0x970   :  { %2069 = vst.msk [vmem:[#allocation10] sm:$0x1] %vm2068_vm2, %v2065_v2  ;;  %v7051_v2 = vld [vmem:[#allocation27_spill] sm:$0xff] }
 0x991   :  { %v2690_v26 = vpop.f32.mrb[16].mxu0 }
 0x992   :  { %v2692_v1 = vpop.f32.mrb[17].mxu0  ;;  %v2707_v46 = vrot.slane %v2690_v26, 1 }
 0x993   :  { %v7054_v1 = vld [vmem:[#allocation23_spill] sm:$0xff] }
 0x995   :  { %v2695_v34 = vpop.f32.mrb[18].mxu0 }
 0x996   :  { %v2708_v35 = vrot.slane %v2695_v34, 1  ;;  %v2697_v52 = vpop.f32.mrb[19].mxu0 }
 0x998   :  { %v2709_v18 = vsel %vm295_vm3, %v2707_v46, %v2708_v35  ;;  %v7056_v46 = vld [vmem:[#allocation30_spill] sm:$0xff] }
 0x999   :  { %v2700_v23 = vpop.f32.mrb[20].mxu0  ;;  %v2715_v27 = vmax.f32 %v2690_v26, %v2709_v18  ;;  %v7053_v26 = vld [vmem:[#allocation28_spill] sm:$0xff] }
 0x99a   :  { %v2710_v0 = vrot.slane %v2700_v23, 1  ;;  %v2702_v30 = vpop.f32.mrb[21].mxu0 }
 0x99c   :  { %v2711_v37 = vsel %vm295_vm3, %v2708_v35, %v2710_v0  ;;  %v2717_v60 = vmax.f32 %v2700_v23, %v2710_v0  ;;  %v7057_v35 = vld [vmem:[#allocation31_spill] sm:$0xff] }
 0x99d   :  { %v2716_v38 = vmax.f32 %v2695_v34, %v2711_v37  ;;  %v7055_v34 = vld [vmem:[#allocation29_spill] sm:$0xff] }
 0x99f   :  { %v5077_v50 = vpack.c.bf16 %v2716_v38, %v2715_v27 }
 0x9a1   :  { %5078 = vmatprep.subr.bf16.mxu0 %v5077_v50 }
 0x9a2   :  { %5080 = vmatpush3.bf16.msra.mxu0 %v5077_v50 }
 0x9a3   :  { %4464 = vmatprep.subr.msk.mxu0 %vm295_vm3, %v2717_v60 }
 0x9a6   :  { %4465 = vmatpush3.msk.msra.mxu0 %vm295_vm3, %v2717_v60 }
 0x9a7   :  { %4467 = vmatmul.mubr.msk.f32.vlgmr.msra.gmra.mrb[22].mxu0 %vm985_vm10, %v5327_v20  ;;  %5081 = vmatprep.subr.bf16.mxu0 %v7025_v15 }
 0x9a8   :  { %5083 = vmatpush3.bf16.msra.mxu0 %v6009_v14  ;;  %4487 = vmatprep.mubr.msk.f32.mxu0 %vm5457_vm11, %v7022_v43  ;;  %v5328_v14 = vld [vmem:[%s6952_s5 + $0x88] sm:$0xff]  ;;  %s5458_s5 = smov [#allocation10]  }
 0x9a9   :  { %5084 = vmatprep.subr.bf16.mxu0 %v7025_v15 }
 0x9ac   :  { %5086 = vmatpush3.bf16.msra.mxu0 %v6021_v53 }
 0x9ad   :  { %5087 = vmatprep.subr.bf16.mxu0 %v7025_v15 }
 0x9b0   :  { %5089 = vmatpush3.bf16.msra.mxu0 %v6031_v59 }
 0x9b1   :  { %5090 = vmatprep.subr.bf16.mxu0 %v7025_v15 }
 0x9b4   :  { %5092 = vmatpush3.bf16.msra.mxu0 %v6041_v6 }
 0x9b5   :  { %4485 = vmatprep.subr.mxu0 %v7022_v43 }
 0x9b8   :  { %4486 = vmatpush3.msra.mxu0 %v5328_v14 }
 0x9b9   :  { %5105 = vmatprep.subr.bf16.mxu0 %v7025_v15 }
 0xa7a   :  { %v4468_v48 = vpop.f32.mrb[22].mxu0 }
 0xa7b   :  { %v2799_v29 = vrot.slane %v4468_v48, 1  ;;  %v2946_v53 = vrot.slane %v4468_v48, 2  ;;  %v3022_v54 = vrot.slane %v4468_v48, 3  ;;  %v3098_v57 = vrot.slane %v4468_v48, 4  ;;  %v2787_v62 = vpop.f32.mrb[23].mxu0 }
 0xa7c   :  { %v2798_v59 = vrot.slane %v2787_v62, 1  ;;  %v2945_v3 = vrot.slane %v2787_v62, 2  ;;  %v3021_v11 = vrot.slane %v2787_v62, 3  ;;  %v3097_v51 = vrot.slane %v2787_v62, 4  ;;  %4509 = vmatmul.mubr.msk.f32.vlgmr.msra.gmra.mrb[24].mxu1 %vm1075_vm12, %v2787_v62  ;;  %v7058_v62 = vld [vmem:[#allocation37_spill] sm:$0xff] }
 0xa7d   :  { %5119 = vmatpush3.bf16.msra.mxu1 %v6073_v24  ;;  %4550 = vmatprep.mubr.msk.f32.mxu1 %vm5457_vm11, %v7022_v43  ;;  %v7041_v24 = vld [vmem:[#allocation15_spill] sm:$0xff] }
 0xa7e   :  { %v2800_v6 = vsel %vm295_vm3, %v2798_v59, %v2799_v29  ;;  %5120 = vmatprep.subr.bf16.mxu1 %v7025_v15  ;;  %v3023_v19 = vsel %vm604_vm6, %v3021_v11, %v3022_v54  ;;  %v2947_v8 = vsel %vm495_vm5, %v2945_v3, %v2946_v53  ;;  %v3099_v5 = vsel %vm310_vm0, %v3097_v51, %v3098_v57  ;;  %v7059_v59 = vld [vmem:[#allocation38_spill] sm:$0xff] }
 0xa7f   :  { %4488 = vmatmul.mubr.msk.f32.vlgmr.msra.gmra.mrb[24].mxu0 %vm1075_vm12, %v2800_v6 }
 0xa80   :  { %5107 = vmatpush3.bf16.msra.mxu0 %v6075_v32  ;;  %4529 = vmatprep.mubr.msk.f32.mxu0 %vm5457_vm11, %v7022_v43  ;;  %v7042_v32 = vld [vmem:[#allocation16_spill] sm:$0xff] }
 0xa81   :  { %5122 = vmatpush3.bf16.msra.mxu1 %v6085_v4  ;;  %5108 = vmatprep.subr.bf16.mxu0 %v7025_v15  ;;  %v7043_v4 = vld [vmem:[#allocation17_spill] sm:$0xff] }
 0xa82   :  { %5123 = vmatprep.subr.bf16.mxu1 %v7025_v15 }
 0xa84   :  { %5110 = vmatpush3.bf16.msra.mxu0 %v6108_v41  ;;  %v7044_v41 = vld [vmem:[#allocation24_spill] sm:$0xff] }
 0xa85   :  { %5125 = vmatpush3.bf16.msra.mxu1 %v6114_v47  ;;  %5111 = vmatprep.subr.bf16.mxu0 %v7025_v15  ;;  %v7045_v47 = vld [vmem:[#allocation18_spill] sm:$0xff] }
 0xa86   :  { %5126 = vmatprep.subr.bf16.mxu1 %v7025_v15 }
 0xa88   :  { %5113 = vmatpush3.bf16.msra.mxu0 %v6130_v55  ;;  %v7046_v55 = vld [vmem:[#allocation19_spill] sm:$0xff] }
 0xa89   :  { %5128 = vmatpush3.bf16.msra.mxu1 %v7041_v24  ;;  %5114 = vmatprep.subr.bf16.mxu0 %v7025_v15 }
 0xa8a   :  { %4548 = vmatprep.subr.mxu1 %v7022_v43 }
 0xa8c   :  { %5116 = vmatpush3.bf16.msra.mxu0 %v7042_v32  ;;  %v7067_v32 = vld [vmem:[#allocation40_spill] sm:$0xff] }
 0xa8d   :  { %4549 = vmatpush3.msra.mxu1 %v7043_v4  ;;  %4527 = vmatprep.subr.mxu0 %v7022_v43  ;;  %v7068_v4 = vld [vmem:[#allocation41_spill] sm:$0xff] }
 0xa8e   :  { %4551 = vmatmul.mubr.msk.f32.vlgmr.msra.gmra.mrb[26].mxu1 %vm1075_vm12, %v3023_v19  ;;  %5141 = vmatprep.subr.bf16.mxu1 %v7025_v15  ;;  %v7063_v19 = vld [vmem:[#allocation33_spill] sm:$0xff] }
 0xa8f   :  { %5143 = vmatpush3.bf16.msra.mxu1 %v7044_v41  ;;  %4606 = vmatprep.mubr.msk.f32.mxu1 %vm5457_vm11, %v7022_v43  ;;  %v7069_v41 = vld [vmem:[#allocation43_spill] sm:$0xff] }
 0xa90   :  { %4528 = vmatpush3.msra.mxu0 %v7045_v47  ;;  %5144 = vmatprep.subr.bf16.mxu1 %v7025_v15  ;;  %v7070_v47 = vld [vmem:[#allocation44_spill] sm:$0xff] }
 0xa91   :  { %4530 = vmatmul.mubr.msk.f32.vlgmr.msra.gmra.mrb[26].mxu0 %vm1075_vm12, %v2947_v8  ;;  %5129 = vmatprep.subr.bf16.mxu0 %v7025_v15  ;;  %v7066_v8 = vld [vmem:[#allocation36_spill] sm:$0xff] }
 0xa92   :  { %5131 = vmatpush3.bf16.msra.mxu0 %v7046_v55  ;;  %4571 = vmatprep.mubr.msk.f32.mxu0 %vm5457_vm11, %v7022_v43 }
 0xa93   :  { %5132 = vmatprep.subr.bf16.mxu0 %v7025_v15  ;;  %5146 = vmatpush3.bf16.msra.mxu1 %v7047_v9  ;;  %v7071_v9 = vld [vmem:[#allocation45_spill] sm:$0xff] }
 0xa94   :  { %5147 = vmatprep.subr.bf16.mxu1 %v7025_v15 }
 0xa96   :  { %5134 = vmatpush3.bf16.msra.mxu0 %v7048_v31  ;;  %v7072_v31 = vld [vmem:[#allocation46_spill] sm:$0xff] }
 0xa97   :  { %5135 = vmatprep.subr.bf16.mxu0 %v7025_v15  ;;  %5149 = vmatpush3.bf16.msra.mxu1 %v7049_v16  ;;  %v7073_v16 = vld [vmem:[#allocation47_spill] sm:$0xff] }
 0xa98   :  { %5150 = vmatprep.subr.bf16.mxu1 %v7025_v15 }
 0xa9a   :  { %5137 = vmatpush3.bf16.msra.mxu0 %v7050_v61  ;;  %v7074_v61 = vld [vmem:[#allocation48_spill] sm:$0xff] }
 0xa9b   :  { %5138 = vmatprep.subr.bf16.mxu0 %v7025_v15  ;;  %5152 = vmatpush3.bf16.msra.mxu1 %v7051_v2 }
 0xa9c   :  { %5153 = vmatprep.subr.bf16.mxu1 %v7025_v15 }
 0xa9e   :  { %5140 = vmatpush3.bf16.msra.mxu0 %v7052_v25 }
 0xa9f   :  { %4569 = vmatprep.subr.mxu0 %v7022_v43  ;;  %5155 = vmatpush3.bf16.msra.mxu1 %v7053_v26 }
 0xaa0   :  { %5156 = vmatprep.subr.bf16.mxu1 %v7025_v15 }
 0xaa2   :  { %4570 = vmatpush3.msra.mxu0 %v7054_v1 }
 0xaa3   :  { %4572 = vmatmul.mubr.msk.f32.vlgmr.msra.gmra.mrb[28].mxu0 %vm1075_vm12, %v3099_v5  ;;  %5158 = vmatpush3.bf16.msra.mxu1 %v7055_v34 }
 0xaa4   :  { %5159 = vmatprep.subr.bf16.mxu1 %v7025_v15  ;;  %4609 = vmatprep.subr.mxu0 %v7022_v43 }
 0xaa5   :  { %4611 = vmatprep.mubr.msk.f32.mxu0 %vm5457_vm11, %v7022_v43 }
 0xaa7   :  { %5161 = vmatpush3.bf16.msra.mxu1 %v7056_v46 }
 0xaa8   :  { %5162 = vmatprep.subr.bf16.mxu1 %v7025_v15 }
 0xaab   :  { %5165 = vmatpush3.bf16.msk.msra.mxu1 %vm5924_vm7, %v7057_v35 }
 0xaac   :  { %5214 = vmatprep.subr.bf16.mxu1 %v7025_v15 }
 0xb4f   :  { %v2941_v52 = vpop.f32.mrb[24].mxu1 }
 0xb50   :  { %v4510_v18 = vpop.f32.mrb[25].mxu1 }
 0xb52   :  { %v2869_v23 = vpop.f32.mrb[24].mxu0 }
 0xb53   :  { %v2942_v27 = vadd.f32 %v2941_v52, %v2869_v23  ;;  %v4489_v0 = vpop.f32.mrb[25].mxu0 }
 0xb61   :  { %v3092_v30 = vpop.f32.mrb[26].mxu1 }
 0xb62   :  { %v4552_v37 = vpop.f32.mrb[27].mxu1 }
 0xb64   :  { %v3016_v38 = vpop.f32.mrb[26].mxu0 }
 0xb65   :  { %v3020_v50 = vadd.f32 %v3016_v38, %v2942_v27  ;;  %v4531_v60 = vpop.f32.mrb[27].mxu0 }
 0xb67   :  { %v3096_v20 = vadd.f32 %v3092_v30, %v3020_v50 }
 0xb76   :  { %v3168_v14 = vpop.f32.mrb[28].mxu0 }
 0xb77   :  { %v3172_v48 = vadd.f32 %v3168_v14, %v3096_v20  ;;  %v4573_v29 = vpop.f32.mrb[29].mxu0 }
 0xb79   :  { %v3173_v53 = vadd.f32 %v6306_v22, %v3172_v48  ;;  %v7060_v22 = vld [vmem:[#allocation39_spill] sm:$0xff] }
 0xb7b   :  { %v3174_v33 = vmax.f32 %v3173_v53, 0.0 }
 0xb7d   :  { %3176 = vrot.lane.b32.xlu1 %v3174_v33, %s5456_s2  ;;  %s3781_s2 = sshll.u32 %s5458_s5, 4  ;;  %s3782_s2 = int_to_ptr.vmem [resolvable:$true] %s3781_s2 }
 0xb7e   :  { %s5417_s25 = scalar_lea.vmem %s3782_s2, 32  ;;  %p5422_p5 = scmp.lt.s32.totalorder %s3782_s2, %s3782_s2 }
 0xb7f   :  { %p5418_p4 = scmp.ne.s32.totalorder %s3782_s2, %s5417_s25  ;;  %p5423_p6 = scmp.lt.s32.totalorder %s5417_s25, %s5417_s25 }
 0xb81   :  { %p5424_p7 = por %p5423_p6, %p5422_p5 }
 0xb83   :  { %p5425_p8 = pnand %p5424_p7, %p5418_p4 }
 0xbef   :  { %v3177_v54 = vpop.permute.xlu1 %3176 }
 0xbf0   :  { %v3179_v57 = vmax.f32 %v3174_v33, %v3177_v54 }
 0xbf2   :  { %4607 = vmatmul.mubr.msk.f32.vlgmr.msra.gmra.mrb[28].mxu1 %vm862_vm8, %v3179_v57 }
 0xbf3   :  { %5216 = vmatpush3.bf16.msra.mxu1 %v6349_v39  ;;  %4720 = vmatprep.mubr.msk.f32.mxu1 %vm5457_vm11, %v7022_v43  ;;  %v7061_v39 = vld [vmem:[#allocation42_spill] sm:$0xff] }
 0xbf4   :  { %5217 = vmatprep.subr.bf16.mxu1 %v7025_v15 }
 0xbf7   :  { %5219 = vmatpush3.bf16.msra.mxu1 %v7058_v62 }
 0xbf8   :  { %5220 = vmatprep.subr.bf16.mxu1 %v7025_v15 }
 0xbfb   :  { %5222 = vmatpush3.bf16.msra.mxu1 %v7059_v59 }
 0xbfc   :  { %5223 = vmatprep.subr.bf16.mxu1 %v7025_v15 }
 0xbff   :  { %5225 = vmatpush3.bf16.msra.mxu1 %v7060_v22 }
 0xc00   :  { %5226 = vmatprep.subr.bf16.mxu1 %v7025_v15 }
 0xc03   :  { %5228 = vmatpush3.bf16.msra.mxu1 %v6389_v13  ;;  %v7062_v13 = vld [vmem:[#allocation32_spill] sm:$0xff] }
 0xc04   :  { %5229 = vmatprep.subr.bf16.mxu1 %v7025_v15 }
 0xc07   :  { %5231 = vmatpush3.bf16.msra.mxu1 %v7061_v39 }
 0xc08   :  { %5232 = vmatprep.subr.bf16.mxu1 %v7025_v15 }
 0xc0b   :  { %5234 = vmatpush3.bf16.msra.mxu1 %v6603_v56  ;;  %v7064_v56 = vld [vmem:[#allocation34_spill] sm:$0xff] }
 0xc0c   :  { %4718 = vmatprep.subr.mxu1 %v7022_v43 }
 0xc0f   :  { %4719 = vmatpush3.msra.mxu1 %v6610_v63  ;;  %v7065_v63 = vld [vmem:[#allocation35_spill] sm:$0xff] }
 0xc10   :  { %5235 = vmatprep.subr.bf16.mxu1 %v7025_v15 }
 0xcc5   :  { %v3249_v3 = vpop.f32.mrb[28].mxu1 }
 0xcc6   :  { %v3254_v11 = vrot.slane %v3249_v3, 1  ;;  %v4608_v51 = vpop.f32.mrb[29].mxu1 }
 0xcc8   :  { %v3256_v6 = vmax.f32 %v3249_v3, %v3254_v11 }
 0xcca   :  { %4610 = vmatpush3.msk.msra.mxu0 %vm295_vm3, %v3256_v6 }
 0xccb   :  { %4612 = vmatmul.mubr.msk.f32.vlgmr.msra.gmra.mrb[30].mxu0 %vm1541_vm13, %v7062_v13  ;;  %5166 = vmatprep.subr.bf16.mxu0 %v7025_v15 }
 0xccc   :  { %5168 = vmatpush3.bf16.msra.mxu0 %v7063_v19  ;;  %4630 = vmatprep.mubr.msk.f32.mxu0 %vm5457_vm11, %v7022_v43 }
 0xccd   :  { %5169 = vmatprep.subr.bf16.mxu0 %v7025_v15 }
 0xcd0   :  { %5171 = vmatpush3.bf16.msra.mxu0 %v7064_v56 }
 0xcd1   :  { %5172 = vmatprep.subr.bf16.mxu0 %v7025_v15 }
 0xcd4   :  { %5174 = vmatpush3.bf16.msra.mxu0 %v7065_v63 }
 0xcd5   :  { %5175 = vmatprep.subr.bf16.mxu0 %v7025_v15 }
 0xcd8   :  { %5177 = vmatpush3.bf16.msra.mxu0 %v7066_v8 }
 0xcd9   :  { %5178 = vmatprep.subr.bf16.mxu0 %v7025_v15 }
 0xd9e   :  { %v3326_v5 = vpop.f32.mrb[30].mxu0 }
 0xd9f   :  { %4631 = vmatmul.mubr.msk.f32.vlgmr.msra.gmra.mrb[32].mxu0 %vm1618_vm14, %v3326_v5  ;;  %v4613_v24 = vpop.f32.mrb[31].mxu0  ;;  %v3404_v55 = vrot.slane %v3326_v5, 1  ;;  %v3478_v2 = vrot.slane %v3326_v5, 2  ;;  %v3552_v25 = vrot.slane %v3326_v5, 3 }
 0xda0   :  { %5180 = vmatpush3.bf16.msra.mxu0 %v7067_v32  ;;  %4649 = vmatprep.mubr.msk.f32.mxu0 %vm5457_vm11, %v7022_v43 }
 0xda1   :  { %5181 = vmatprep.subr.bf16.mxu0 %v7025_v15 }
 0xda4   :  { %5183 = vmatpush3.bf16.msra.mxu0 %v7068_v4 }
 0xda5   :  { %5184 = vmatprep.subr.bf16.mxu0 %v7025_v15 }
 0xda8   :  { %5186 = vmatpush3.bf16.msra.mxu0 %v7069_v41 }
 0xda9   :  { %5187 = vmatprep.subr.bf16.mxu0 %v7025_v15 }
 0xdac   :  { %5189 = vmatpush3.bf16.msra.mxu0 %v7070_v47 }
 0xdad   :  { %5190 = vmatprep.subr.bf16.mxu0 %v7025_v15 }
 0xdaf   :  { %4650 = vmatmul.mubr.msk.f32.vlgmr.msra.gmra.mrb[32].mxu0 %vm1618_vm14, %v3404_v55 }
 0xdb0   :  { %5192 = vmatpush3.bf16.msra.mxu0 %v7071_v9  ;;  %4668 = vmatprep.mubr.msk.f32.mxu0 %vm5457_vm11, %v7022_v43 }
 0xdb1   :  { %5193 = vmatprep.subr.bf16.mxu0 %v7025_v15 }
 0xdb4   :  { %5195 = vmatpush3.bf16.msra.mxu0 %v7072_v31 }
 0xdb5   :  { %5196 = vmatprep.subr.bf16.mxu0 %v7025_v15 }
 0xdb8   :  { %5198 = vmatpush3.bf16.msra.mxu0 %v7073_v16 }
 0xdb9   :  { %5199 = vmatprep.subr.bf16.mxu0 %v7025_v15 }
 0xdbc   :  { %5201 = vmatpush3.bf16.msra.mxu0 %v7074_v61 }
 0xdbd   :  { %5202 = vmatprep.subr.bf16.mxu0 %v7025_v15 }
 0xdbf   :  { %4669 = vmatmul.mubr.msk.f32.vlgmr.msra.gmra.mrb[32].mxu0 %vm1618_vm14, %v3478_v2 }
 0xdc0   :  { %5204 = vmatpush3.bf16.msra.mxu0 %v6441_v42  ;;  %4687 = vmatprep.mubr.msk.f32.mxu0 %vm5457_vm11, %v7022_v43 }
 0xdc1   :  { %5205 = vmatprep.subr.bf16.mxu0 %v7025_v15 }
 0xdc4   :  { %5207 = vmatpush3.bf16.msra.mxu0 %v6447_v49 }
 0xdc5   :  { %5208 = vmatprep.subr.bf16.mxu0 %v7025_v15 }
 0xdc8   :  { %5210 = vmatpush3.bf16.msra.mxu0 %v6453_v17 }
 0xdc9   :  { %5211 = vmatprep.subr.bf16.mxu0 %v7025_v15 }
 0xdcc   :  { %5213 = vmatpush3.bf16.msra.mxu0 %v6457_v58 }
 0xdcf   :  { %4688 = vmatmul.mubr.msk.f32.vlgmr.msra.gmra.mrb[32].mxu0 %vm1618_vm14, %v3552_v25 }
 0xea2   :  { %v3621_v26 = vpop.f32.mrb[32].mxu0 }
 0xea3   :  { %v5251_v42 = vadd.f32 %v3621_v26, %v6614_v12  ;;  %v4689_v1 = vpop.f32.mrb[33].mxu0 }
 0xea5   :  { %v3626_v34 = vmax.f32 %v5251_v42, 0.0 }
 0xea7   :  { %4721 = vmatmul.mubr.msk.f32.vlgmr.msra.gmra.mrb[30].mxu1 %vm1916_vm15, %v3626_v34 }
 0xea8   :  { %5237 = vmatpush3.bf16.msra.mxu1 %v6634_v45  ;;  %4745 = vmatprep.mubr.msk.f32.mxu1 %vm5457_vm11, %v7022_v43 }
 0xea9   :  { %5238 = vmatprep.subr.bf16.mxu1 %v7025_v15 }
 0xeac   :  { %5240 = vmatpush3.bf16.msra.mxu1 %v6646_v7 }
 0xead   :  { %5241 = vmatprep.subr.bf16.mxu1 %v7025_v15 }
 0xeb0   :  { %5243 = vmatpush3.bf16.msra.mxu1 %v6668_v40 }
 0xeb1   :  { %5244 = vmatprep.subr.bf16.mxu1 %v7025_v15 }
 0xeb4   :  { %5246 = vmatpush3.bf16.msra.mxu1 %v6687_v36 }
 0xeb5   :  { %5247 = vmatprep.subr.bf16.mxu1 %v7025_v15 }
 0xeb8   :  { %5249 = vmatpush3.bf16.msra.mxu1 %v6698_v10 }
 0xeb9   :  { %4743 = vmatprep.subr.mxu1 %v7022_v43 }
 0xebc   :  { %4744 = vmatpush3.msk.msra.mxu1 %vm310_vm0, %v6706_v21 }
 0xf7a   :  { %v3696_v49 = vpop.f32.mrb[30].mxu1 }
 0xf7b   :  { %v3697_v17 = vadd.f32 %v3696_v49, %v6711_v28  ;;  %v4722_v58 = vpop.f32.mrb[31].mxu1 }
 0xf7d   :  { %v3700_v12 = vmax.f32 %v3697_v17, 0.0 }
 0xf7f   :  { %4746 = vmatmul.mubr.msk.f32.vlgmr.msra.gmra.mrb[32].mxu1 %vm1991_vm1, %v3700_v12 }
0x1052   :  { %v3770_v45 = vpop.f32.mrb[32].mxu1 }
0x1053   :  { %v3771_v15 = vadd.f32 %v3770_v45, %v6753_v44  ;;  %v4747_v7 = vpop.f32.mrb[33].mxu1 }
0x1055   :  { %3775 = vst.msk [vmem:[#allocation10 + $0x1] sm:$0x1] %vm2068_vm2, %v3771_v15 }
0x1056   :  { %5428 = shalt.err (!%p5425_p8)
}
0x1057   :  { %s5429_s17 = scalar_lea.hbm %s6962_s15, 32 }
0x1058   :  { %p5430_p9 = scmp.ne.s32.totalorder %s6962_s15, %s5429_s17  ;;  %p5433_p10 = scmp.lt.u32.totalorder %s5429_s17, %s6962_s15 }
0x105a   :  { %p5435_p11 = pnand %p5433_p10, %p5430_p9 }
0x105c   :  { %5438 = shalt.err (!%p5435_p11)
}
0x105d   :  { %s5459_s8 = smov 16   ;;  %s5460_s12 = smov 1  }
0x105e   :  { %3787 = dma.vmem_to_hbm [thread:$0]  %s3782_s2, 32, %s6962_s15, [#allocation4], %s5459_s8, %s5459_s8, %s5460_s12  }
0x105f   :  { %5445 = dma.done.wait [#allocation4], 32  }
0x1060   :  { %5446 = vsyncadd [#allocation4], 4294967264 }
0x1061   :  { %3791 = vsyncpa [#allocation3], 1 }
0x1062   :  { %3792 = vsyncpa [#allocation6], 1 }
0x1063   :  { %3793 = vsyncpa [#allocation9], 1 }
0x1064   :  { %3794 = vsyncpa [#allocation4], 1 }

</bundles_post_ra>
